<compile_context>
chip_gen: v5e
topology: v5e:2x2
jax: 0.10.0
libtpu: 0.0.40
codegen_flags: <defaults>
</compile_context>

<pallas_src>
import functools

import jax
import jax.numpy as jnp
from jax.experimental import pallas as pl
from jax.experimental.pallas import tpu as pltpu


def _round_up(x, m):
    return (x + m - 1) // m * m


# Row layout of the small (24, F) weight slab.
_W_GEO = 0      # rows  0..11 : geo rows of std_1 first Linear  (12, F)
_W_S = 12       # rows 12..13 : scalar-channel rows of std_2 / std_3 first Linear
_W_OUT = 14     # rows 14..16 : final Linear(F, 1) weights (as rows)
_B_FIRST = 17   # rows 17..19 : first-Linear biases
_B_RES = 20     # rows 20..22 : residual-Linear biases
_B_OUT = 23     # row  23     : [b_out1, b_out2, b_out3, 0, ...]


# ---------------------------------------------------------------------------
# Fused kernel: streamed kNN + local_cov projection + std_1 / std_2 / std_3
# Grid: (batch, query_tile).
# ---------------------------------------------------------------------------
def _fused_kernel(pct_ref, pcq_ref, lat_ref,
                  w_lat_ref, w_res_ref, w_small_ref,
                  out_ref, *, n_valid):
    f32 = jnp.float32
    T = pcq_ref.shape[1]           # query points per tile
    F = lat_ref.shape[2]           # feature dim
    n_chunks = pct_ref.shape[1]    # number of key chunks
    TK = pct_ref.shape[3]          # key-chunk width

    t = pl.program_id(1)
    start = t * T

    q = pcq_ref[0]                                                 # (T, 3)
    qsq = jnp.sum(q * q, axis=-1, keepdims=True)                   # (T, 1)
    qidx = start + jax.lax.broadcasted_iota(jnp.int32, (T, 1), 0)  # (T, 1)
    lidx = jax.lax.broadcasted_iota(jnp.int32, (1, TK), 1)         # (1, TK)

    # --- nearest *other* point, streamed over key chunks --------------------
    def chunk_body(c, carry):
        best_d, nnx, nny, nnz = carry
        k3 = pct_ref[0, c]                                          # (3, TK)
        ksq = jnp.sum(k3 * k3, axis=0, keepdims=True)               # (1, TK)
        d = qsq + ksq - 2.0 * jnp.dot(q, k3, preferred_element_type=f32)
        kidx = c * TK + lidx                                        # (1, TK)
        invalid = (kidx == qidx) | (kidx >= n_valid)                # self + pad
        d = jnp.where(invalid, jnp.inf, d)                          # (T, TK)
        cmin = jnp.min(d, axis=-1, keepdims=True)                   # (T, 1)
        # first (lowest-index) column attaining the chunk minimum (argmin tie-break)
        first = jnp.min(jnp.where(d <= cmin, lidx, TK), axis=-1, keepdims=True)
        sel = (lidx == first).astype(f32)                           # (T, TK) one-hot
        # neighbour coords via VPU multiply + XLU lane reduce (no MXU gather)
        cx = jnp.sum(sel * k3[0:1, :], axis=-1, keepdims=True)
        cy = jnp.sum(sel * k3[1:2, :], axis=-1, keepdims=True)
        cz = jnp.sum(sel * k3[2:3, :], axis=-1, keepdims=True)
        better = cmin < best_d                                      # earlier chunk wins ties
        return (jnp.where(better, cmin, best_d),
                jnp.where(better, cx, nnx),
                jnp.where(better, cy, nny),
                jnp.where(better, cz, nnz))

    init = (jnp.full((T, 1), jnp.inf, f32),
            jnp.zeros((T, 1), f32),
            jnp.zeros((T, 1), f32),
            jnp.zeros((T, 1), f32))
    if n_chunks == 1:
        carry = chunk_body(0, init)
    else:
        carry = jax.lax.fori_loop(0, n_chunks, chunk_body, init)
    _, nnx, nny, nnz = carry

    # --- geo features projected straight into F lanes (12 VPU FMAs) ---------
    ws = w_small_ref[...]                                           # (24, F)
    q_cols = (q[:, 0:1], q[:, 1:2], q[:, 2:3])
    nn_cols = (nnx, nny, nnz)
    pre_geo = jnp.zeros((T, F), f32)
    for i in range(3):
        pre_geo = pre_geo + q_cols[i] * ws[_W_GEO + i:_W_GEO + i + 1, :]
    for i in range(3):
        for j in range(3):
            r = _W_GEO + 3 + 3 * i + j
            pre_geo = pre_geo + (q_cols[i] * nn_cols[j]) * ws[r:r + 1, :]

    # --- fused latent projection for all three heads -------------------------
    lat = lat_ref[0]                                                # (T, F)
    pre_lat = jnp.dot(lat, w_lat_ref[...], preferred_element_type=f32)  # (T, 3F)

    def head(pre, s):
        h = jnp.maximum(pre, 0.0)                                   # ReLU
        h = (h + jnp.dot(h, w_res_ref[s], preferred_element_type=f32)
             + ws[_B_RES + s:_B_RES + s + 1, :])
        h = jnp.maximum(h, 0.0)                                     # ReLU
        # final Linear(F, 1) as a VPU/XLU lane reduction (MXU would be ~1% used)
        o = jnp.sum(h * ws[_W_OUT + s:_W_OUT + s + 1, :], axis=-1, keepdims=True)
        return o + ws[_B_OUT:_B_OUT + 1, s:s + 1]

    pre1 = pre_lat[:, 0:F] + pre_geo + ws[_B_FIRST:_B_FIRST + 1, :]
    o1 = head(pre1, 0)                                              # (T, 1)

    pre2 = (pre_lat[:, F:2 * F] + o1 * ws[_W_S:_W_S + 1, :]
            + ws[_B_FIRST + 1:_B_FIRST + 2, :])
    o2 = o1 + head(pre2, 1)

    pre3 = (pre_lat[:, 2 * F:3 * F] + o2 * ws[_W_S + 1:_W_S + 2, :]
            + ws[_B_FIRST + 2:_B_FIRST + 3, :])
    o3 = o2 + head(pre3, 2)                                         # (T, 1)

    out_ref[...] = o3.T[None]                                       # (1, 1, T) lane-dense store


# ---------------------------------------------------------------------------
# Wrapper
# ---------------------------------------------------------------------------
def variance_network_forward(latent, recon_pc, params, *, max_tile=512):
    assert max_tile % 128 == 0
    B, N, F = latent.shape
    assert recon_pc.shape == (B, N, 3)
    latent = latent.astype(jnp.float32)
    recon_pc = recon_pc.astype(jnp.float32)

    # Tile choice: multiples of 128 once N >= 128 (lane-dense stores); a
    # single full tile for small N.
    if N > max_tile:
        T = max_tile
    elif N >= 128:
        T = _round_up(N, 128)
    else:
        T = _round_up(N, 8)
    N_pad = _round_up(N, T)
    KC = N_pad // T                       # key chunks == query tiles

    if N_pad != N:
        # Padded keys are masked inside the kernel; padded query rows give
        # finite garbage that is sliced away below.
        pc_p = jnp.zeros((B, N_pad, 3), jnp.float32).at[:, :N].set(recon_pc)
        lat_p = jnp.zeros((B, N_pad, F), jnp.float32).at[:, :N].set(latent)
    else:
        pc_p, lat_p = recon_pc, latent

    # Lane-dense key layout: (B, KC, 3, TK) so each key chunk is (3, TK).
    pc_keys = jnp.transpose(pc_p.reshape(B, KC, T, 3), (0, 1, 3, 2))

    w_lat = params["w_lat"]       # (F, 3F)
    w_res = params["w_res"]       # (3, F, F)
    w_small = params["w_small"]   # (24, F)

    out = pl.pallas_call(
        functools.partial(_fused_kernel, n_valid=N),
        out_shape=jax.ShapeDtypeStruct((B, 1, N_pad), jnp.float32),
        grid=(B, KC),
        in_specs=[
            pl.BlockSpec((1, KC, 3, T), lambda b, t: (b, 0, 0, 0)),  # full key cloud
            pl.BlockSpec((1, T, 3), lambda b, t: (b, t, 0)),         # query tile
            pl.BlockSpec((1, T, F), lambda b, t: (b, t, 0)),         # latent tile
            pl.BlockSpec((F, 3 * F), lambda b, t: (0, 0)),
            pl.BlockSpec((3, F, F), lambda b, t: (0, 0, 0)),
            pl.BlockSpec((24, F), lambda b, t: (0, 0)),
        ],
        out_specs=pl.BlockSpec((1, 1, T), lambda b, t: (b, 0, t)),
        compiler_params=pltpu.CompilerParams(
            dimension_semantics=("parallel", "parallel"),
            vmem_limit_bytes=48 * 1024 * 1024),
    )(pc_keys, pc_p, lat_p, w_lat, w_res, w_small)

    return out[:, 0, :N, None]                                       # (B, N, 1)


# ---------------------------------------------------------------------------
# Deterministic parameter init (torch nn.Linear-style uniform bounds),
# stored directly in the packed layout the kernel consumes.
# ---------------------------------------------------------------------------
def init_params(key, F):
    assert F >= 3
    ks = jax.random.split(key, 9)

    def lin(k, fan_in, fan_out):
        kw, kb = jax.random.split(k)
        bound = 1.0 / jnp.sqrt(jnp.float32(fan_in))
        w = jax.random.uniform(kw, (fan_in, fan_out), jnp.float32, -bound, bound)
        b = jax.random.uniform(kb, (fan_out,), jnp.float32, -bound, bound)
        return w, b

    w1, b1 = lin(ks[0], F + 12, F)        # std_1: Linear(F+12, F)
    w1r, b1r = lin(ks[1], F, F)
    w1o, b1o = lin(ks[2], F, 1)
    w2, b2 = lin(ks[3], F + 1, F)         # std_2: Linear(F+1, F)
    w2r, b2r = lin(ks[4], F, F)
    w2o, b2o = lin(ks[5], F, 1)
    w3, b3 = lin(ks[6], F + 1, F)         # std_3: Linear(F+1, F)
    w3r, b3r = lin(ks[7], F, F)
    w3o, b3o = lin(ks[8], F, 1)

    b_out_row = (jnp.zeros((F,), jnp.float32)
                 .at[0].set(b1o[0]).at[1].set(b2o[0]).at[2].set(b3o[0]))
    w_small = jnp.concatenate([
        w1[F:F + 12],                              # rows  0..11 geo rows
        w2[F:F + 1], w3[F:F + 1],                  # rows 12..13 scalar rows
        w1o.T, w2o.T, w3o.T,                       # rows 14..16 output rows
        b1[None], b2[None], b3[None],              # rows 17..19 first biases
        b1r[None], b2r[None], b3r[None],           # rows 20..22 residual biases
        b_out_row[None],                           # row  23     output biases
    ], axis=0)                                     # (24, F)

    return {
        "w_lat": jnp.concatenate([w1[:F], w2[:F], w3[:F]], axis=1),  # (F, 3F)
        "w_res": jnp.stack([w1r, w2r, w3r]),                         # (3, F, F)
        "w_small": w_small,                                          # (24, F)
    }


# ---------------------------------------------------------------------------
# Pure-JAX reference (mirrors the PyTorch forward) for a correctness check
# ---------------------------------------------------------------------------
def reference_forward(latent, pc, p):
    B, N, F = latent.shape
    hp = jax.lax.Precision.HIGHEST

    ws = p["w_small"]
    w_geo = ws[0:12]
    w_s = ws[12:14]
    w_out = ws[14:17]
    b_first = ws[17:20]
    b_res = ws[20:23]
    b_out = ws[23, 0:3]

    diff = pc[:, :, None, :] - pc[:, None, :, :]
    d = jnp.sum(diff * diff, axis=-1)
    d = jnp.where(jnp.eye(N, dtype=bool)[None], jnp.inf, d)
    nn_idx = jnp.argmin(d, axis=-1)
    nn = jnp.take_along_axis(pc, nn_idx[..., None], axis=1)
    outer = (pc[..., :, None] * nn[..., None, :]).reshape(B, N, 9)
    geo = jnp.concatenate([pc, outer], axis=-1)

    lat = latent.reshape(B * N, F)
    g = geo.reshape(B * N, 12)

    def mm(a, b):
        return jnp.matmul(a, b, precision=hp)

    def head(pre, s):
        h = jnp.maximum(pre, 0.0)
        h = h + mm(h, p["w_res"][s]) + b_res[s]
        h = jnp.maximum(h, 0.0)
        return mm(h, w_out[s][:, None]) + b_out[s]

    pre_lat = mm(lat, p["w_lat"])
    o1 = head(pre_lat[:, 0:F] + mm(g, w_geo) + b_first[0], 0)
    o2 = o1 + head(pre_lat[:, F:2 * F] + o1 * w_s[0] + b_first[1], 1)
    o3 = o2 + head(pre_lat[:, 2 * F:3 * F] + o2 * w_s[1] + b_first[2], 2)
    return o3.reshape(B, N, 1)


if __name__ == "__main__":
    key = jax.random.PRNGKey(0)
    k_lat, k_pc, k_par = jax.random.split(key, 3)

    # Case 1: single tile, N multiple of 8
    B, N, F = 2, 64, 32
    latent = jax.random.normal(k_lat, (B, N, F), jnp.float32)
    recon_pc = jax.random.normal(k_pc, (B, N, 3), jnp.float32)
    params = init_params(k_par, F)

    out = jax.block_until_ready(variance_network_forward(latent, recon_pc, params))
    assert out.shape == (B, N, 1)
    ref = reference_forward(latent, recon_pc, params)
    err = float(jnp.max(jnp.abs(out - ref)))
    assert jnp.allclose(out, ref, atol=2e-3, rtol=2e-3), f"mismatch N=64, max err {err}"

    # Case 2: N not a multiple of 8 (exercises the padding / mask path)
    N2 = 100
    latent2 = jax.random.normal(k_lat, (B, N2, F), jnp.float32)
    recon_pc2 = jax.random.normal(k_pc, (B, N2, 3), jnp.float32)
    out2 = jax.block_until_ready(variance_network_forward(latent2, recon_pc2, params))
    ref2 = reference_forward(latent2, recon_pc2, params)
    assert out2.shape == (B, N2, 1)
    err2 = float(jnp.max(jnp.abs(out2 - ref2)))
    assert jnp.allclose(out2, ref2, atol=2e-3, rtol=2e-3), f"mismatch N=100, max err {err2}"

    # Case 3: multiple tiles + key-chunk streaming (force small max_tile)
    N3 = 300
    latent3 = jax.random.normal(k_lat, (B, N3, F), jnp.float32)
    recon_pc3 = jax.random.normal(k_pc, (B, N3, 3), jnp.float32)
    out3 = jax.block_until_ready(
        variance_network_forward(latent3, recon_pc3, params, max_tile=128))
    ref3 = reference_forward(latent3, recon_pc3, params)
    assert out3.shape == (B, N3, 1)
    err3 = float(jnp.max(jnp.abs(out3 - ref3)))
    assert jnp.allclose(out3, ref3, atol=2e-3, rtol=2e-3), f"mismatch N=300, max err {err3}"

    print("KERNEL_OK")
</pallas_src>

<mosaic_0001>
module attributes {stable_mosaic.version = 11 : i64} {
  func.func @_fused_kernel(%arg0: i32, %arg1: i32, %arg2: memref<1x1x3x64xf32, #tpu.memory_space<vmem>>, %arg3: memref<1x64x3xf32, #tpu.memory_space<vmem>>, %arg4: memref<1x64x32xf32, #tpu.memory_space<vmem>>, %arg5: memref<32x96xf32, #tpu.memory_space<vmem>>, %arg6: memref<3x32x32xf32, #tpu.memory_space<vmem>>, %arg7: memref<24x32xf32, #tpu.memory_space<vmem>>, %arg8: memref<1x1x64xf32, #tpu.memory_space<vmem>>) attributes {dimension_semantics = [#tpu.dimension_semantics<parallel>, #tpu.dimension_semantics<parallel>], iteration_bounds = array<i64: 2, 1>, scalar_prefetch = 0 : i64, scratch_operands = 0 : i64, tpu.core_type = #tpu.core_type<tc>, window_params = [{transform_indices = @transform_0, window_bounds = array<i64: 1, 1, 3, 64>}, {transform_indices = @transform_1, window_bounds = array<i64: 1, 64, 3>}, {transform_indices = @transform_2, window_bounds = array<i64: 1, 64, 32>}, {pipeline_mode = #tpu.pipeline_mode<synchronous>, transform_indices = @transform_3, window_bounds = array<i64: 32, 96>}, {pipeline_mode = #tpu.pipeline_mode<synchronous>, transform_indices = @transform_4, window_bounds = array<i64: 3, 32, 32>}, {pipeline_mode = #tpu.pipeline_mode<synchronous>, transform_indices = @transform_5, window_bounds = array<i64: 24, 32>}, {transform_indices = @transform_6, window_bounds = array<i64: 1, 1, 64>}]} {
    %c64_i32 = arith.constant 64 : i32
    %0 = arith.muli %arg1, %c64_i32 : i32
    %c0 = arith.constant 0 : index
    %c0_0 = arith.constant 0 : index
    %c0_1 = arith.constant 0 : index
    %1 = vector.load %arg3[%c0, %c0_0, %c0_1] : memref<1x64x3xf32, #tpu.memory_space<vmem>>, vector<1x64x3xf32>
    %2 = vector.shape_cast %1 : vector<1x64x3xf32> to vector<64x3xf32>
    %3 = arith.mulf %2, %2 : vector<64x3xf32>
    %cst = arith.constant dense<0.000000e+00> : vector<64xf32>
    %4 = vector.multi_reduction <add>, %3, %cst [1] : vector<64x3xf32> to vector<64xf32>
    %5 = vector.shape_cast %4 : vector<64xf32> to vector<64x1xf32>
    %6 = tpu.iota {dimensions = array<i32: 0>} : vector<64x1xi32>
    %7 = vector.broadcast %0 : i32 to vector<64x1xi32>
    %8 = arith.addi %7, %6 : vector<64x1xi32>
    %9 = tpu.iota {dimensions = array<i32: 1>} : vector<1x64xi32>
    %cst_2 = arith.constant 0x7F800000 : f32
    %10 = vector.broadcast %cst_2 : f32 to vector<64x1xf32>
    %cst_3 = arith.constant 0.000000e+00 : f32
    %11 = vector.broadcast %cst_3 : f32 to vector<64x1xf32>
    %cst_4 = arith.constant 0.000000e+00 : f32
    %12 = vector.broadcast %cst_4 : f32 to vector<64x1xf32>
    %cst_5 = arith.constant 0.000000e+00 : f32
    %13 = vector.broadcast %cst_5 : f32 to vector<64x1xf32>
    %c0_6 = arith.constant 0 : index
    %c0_7 = arith.constant 0 : index
    %c0_8 = arith.constant 0 : index
    %c0_9 = arith.constant 0 : index
    %14 = vector.load %arg2[%c0_6, %c0_7, %c0_8, %c0_9] : memref<1x1x3x64xf32, #tpu.memory_space<vmem>>, vector<1x1x3x64xf32>
    %15 = vector.shape_cast %14 : vector<1x1x3x64xf32> to vector<3x64xf32>
    %16 = arith.mulf %15, %15 : vector<3x64xf32>
    %cst_10 = arith.constant dense<0.000000e+00> : vector<64xf32>
    %17 = vector.multi_reduction <add>, %16, %cst_10 [0] : vector<3x64xf32> to vector<64xf32>
    %18 = vector.shape_cast %17 : vector<64xf32> to vector<1x64xf32>
    %19 = vector.broadcast %5 : vector<64x1xf32> to vector<64x64xf32>
    %20 = vector.broadcast %18 : vector<1x64xf32> to vector<64x64xf32>
    %21 = arith.addf %19, %20 : vector<64x64xf32>
    %cst_11 = arith.constant dense<0.000000e+00> : vector<64x64xf32>
    %22 = tpu.matmul %2, %15, %cst_11 {dimension_numbers = #tpu.dot_dimension_numbers<[1], [0], [0], [1], [0, 0, 1, 1], [], []>} : vector<64x3xf32>, vector<3x64xf32>, vector<64x64xf32> -> vector<64x64xf32>
    %cst_12 = arith.constant 2.000000e+00 : f32
    %23 = vector.broadcast %cst_12 : f32 to vector<64x64xf32>
    %24 = arith.mulf %23, %22 : vector<64x64xf32>
    %25 = arith.subf %21, %24 : vector<64x64xf32>
    %c0_i32 = arith.constant 0 : i32
    %26 = vector.broadcast %c0_i32 : i32 to vector<1x64xi32>
    %27 = arith.addi %26, %9 : vector<1x64xi32>
    %28 = vector.broadcast %27 : vector<1x64xi32> to vector<64x64xi32>
    %29 = vector.broadcast %8 : vector<64x1xi32> to vector<64x64xi32>
    %30 = arith.cmpi eq, %28, %29 : vector<64x64xi32>
    %c64_i32_13 = arith.constant 64 : i32
    %31 = vector.broadcast %c64_i32_13 : i32 to vector<1x64xi32>
    %32 = arith.cmpi sge, %27, %31 : vector<1x64xi32>
    %33 = vector.broadcast %32 : vector<1x64xi1> to vector<64x64xi1>
    %34 = arith.ori %30, %33 : vector<64x64xi1>
    %cst_14 = arith.constant 0x7F800000 : f32
    %35 = vector.broadcast %cst_14 : f32 to vector<64x64xf32>
    %36 = arith.select %34, %35, %25 : vector<64x64xi1>, vector<64x64xf32>
    %cst_15 = arith.constant dense<0x7F800000> : vector<64xf32>
    %37 = vector.multi_reduction <minimumf>, %36, %cst_15 [1] : vector<64x64xf32> to vector<64xf32>
    %38 = vector.shape_cast %37 : vector<64xf32> to vector<64x1xf32>
    %39 = vector.broadcast %38 : vector<64x1xf32> to vector<64x64xf32>
    %40 = arith.cmpf ole, %36, %39 : vector<64x64xf32>
    %c64_i32_16 = arith.constant 64 : i32
    %41 = vector.shape_cast %9 : vector<1x64xi32> to vector<1x64xi32>
    %42 = vector.broadcast %41 : vector<1x64xi32> to vector<64x64xi32>
    %43 = vector.broadcast %c64_i32_16 : i32 to vector<64x64xi32>
    %44 = arith.select %40, %42, %43 : vector<64x64xi1>, vector<64x64xi32>
    %cst_17 = arith.constant dense<2147483647> : vector<64xi32>
    %45 = vector.multi_reduction <minsi>, %44, %cst_17 [1] : vector<64x64xi32> to vector<64xi32>
    %46 = vector.shape_cast %45 : vector<64xi32> to vector<64x1xi32>
    %47 = vector.broadcast %9 : vector<1x64xi32> to vector<64x64xi32>
    %48 = vector.broadcast %46 : vector<64x1xi32> to vector<64x64xi32>
    %49 = arith.cmpi eq, %47, %48 : vector<64x64xi32>
    %50 = arith.extui %49 : vector<64x64xi1> to vector<64x64xi32>
    %51 = arith.sitofp %50 : vector<64x64xi32> to vector<64x64xf32>
    %52 = vector.extract_strided_slice %15 {offsets = [0, 0], sizes = [1, 64], strides = [1, 1]} : vector<3x64xf32> to vector<1x64xf32>
    %53 = vector.broadcast %52 : vector<1x64xf32> to vector<64x64xf32>
    %54 = arith.mulf %51, %53 : vector<64x64xf32>
    %cst_18 = arith.constant dense<0.000000e+00> : vector<64xf32>
    %55 = vector.multi_reduction <add>, %54, %cst_18 [1] : vector<64x64xf32> to vector<64xf32>
    %56 = vector.shape_cast %55 : vector<64xf32> to vector<64x1xf32>
    %57 = vector.extract_strided_slice %15 {offsets = [1, 0], sizes = [1, 64], strides = [1, 1]} : vector<3x64xf32> to vector<1x64xf32>
    %58 = vector.broadcast %57 : vector<1x64xf32> to vector<64x64xf32>
    %59 = arith.mulf %51, %58 : vector<64x64xf32>
    %cst_19 = arith.constant dense<0.000000e+00> : vector<64xf32>
    %60 = vector.multi_reduction <add>, %59, %cst_19 [1] : vector<64x64xf32> to vector<64xf32>
    %61 = vector.shape_cast %60 : vector<64xf32> to vector<64x1xf32>
    %62 = vector.extract_strided_slice %15 {offsets = [2, 0], sizes = [1, 64], strides = [1, 1]} : vector<3x64xf32> to vector<1x64xf32>
    %63 = vector.broadcast %62 : vector<1x64xf32> to vector<64x64xf32>
    %64 = arith.mulf %51, %63 : vector<64x64xf32>
    %cst_20 = arith.constant dense<0.000000e+00> : vector<64xf32>
    %65 = vector.multi_reduction <add>, %64, %cst_20 [1] : vector<64x64xf32> to vector<64xf32>
    %66 = vector.shape_cast %65 : vector<64xf32> to vector<64x1xf32>
    %67 = arith.cmpf olt, %38, %10 : vector<64x1xf32>
    %68 = arith.select %67, %56, %11 : vector<64x1xi1>, vector<64x1xf32>
    %69 = arith.select %67, %61, %12 : vector<64x1xi1>, vector<64x1xf32>
    %70 = arith.select %67, %66, %13 : vector<64x1xi1>, vector<64x1xf32>
    %c0_21 = arith.constant 0 : index
    %c0_22 = arith.constant 0 : index
    %71 = vector.load %arg7[%c0_21, %c0_22] : memref<24x32xf32, #tpu.memory_space<vmem>>, vector<24x32xf32>
    %72 = vector.extract_strided_slice %2 {offsets = [0, 0], sizes = [64, 1], strides = [1, 1]} : vector<64x3xf32> to vector<64x1xf32>
    %73 = vector.extract_strided_slice %2 {offsets = [0, 1], sizes = [64, 1], strides = [1, 1]} : vector<64x3xf32> to vector<64x1xf32>
    %74 = vector.extract_strided_slice %2 {offsets = [0, 2], sizes = [64, 1], strides = [1, 1]} : vector<64x3xf32> to vector<64x1xf32>
    %cst_23 = arith.constant 0.000000e+00 : f32
    %75 = vector.broadcast %cst_23 : f32 to vector<64x32xf32>
    %76 = vector.extract_strided_slice %71 {offsets = [0, 0], sizes = [1, 32], strides = [1, 1]} : vector<24x32xf32> to vector<1x32xf32>
    %77 = vector.broadcast %72 : vector<64x1xf32> to vector<64x32xf32>
    %78 = vector.broadcast %76 : vector<1x32xf32> to vector<64x32xf32>
    %79 = arith.mulf %77, %78 : vector<64x32xf32>
    %80 = arith.addf %75, %79 : vector<64x32xf32>
    %81 = vector.extract_strided_slice %71 {offsets = [1, 0], sizes = [1, 32], strides = [1, 1]} : vector<24x32xf32> to vector<1x32xf32>
    %82 = vector.broadcast %73 : vector<64x1xf32> to vector<64x32xf32>
    %83 = vector.broadcast %81 : vector<1x32xf32> to vector<64x32xf32>
    %84 = arith.mulf %82, %83 : vector<64x32xf32>
    %85 = arith.addf %80, %84 : vector<64x32xf32>
    %86 = vector.extract_strided_slice %71 {offsets = [2, 0], sizes = [1, 32], strides = [1, 1]} : vector<24x32xf32> to vector<1x32xf32>
    %87 = vector.broadcast %74 : vector<64x1xf32> to vector<64x32xf32>
    %88 = vector.broadcast %86 : vector<1x32xf32> to vector<64x32xf32>
    %89 = arith.mulf %87, %88 : vector<64x32xf32>
    %90 = arith.addf %85, %89 : vector<64x32xf32>
    %91 = arith.mulf %72, %68 : vector<64x1xf32>
    %92 = vector.extract_strided_slice %71 {offsets = [3, 0], sizes = [1, 32], strides = [1, 1]} : vector<24x32xf32> to vector<1x32xf32>
    %93 = vector.broadcast %91 : vector<64x1xf32> to vector<64x32xf32>
    %94 = vector.broadcast %92 : vector<1x32xf32> to vector<64x32xf32>
    %95 = arith.mulf %93, %94 : vector<64x32xf32>
    %96 = arith.addf %90, %95 : vector<64x32xf32>
    %97 = arith.mulf %72, %69 : vector<64x1xf32>
    %98 = vector.extract_strided_slice %71 {offsets = [4, 0], sizes = [1, 32], strides = [1, 1]} : vector<24x32xf32> to vector<1x32xf32>
    %99 = vector.broadcast %97 : vector<64x1xf32> to vector<64x32xf32>
    %100 = vector.broadcast %98 : vector<1x32xf32> to vector<64x32xf32>
    %101 = arith.mulf %99, %100 : vector<64x32xf32>
    %102 = arith.addf %96, %101 : vector<64x32xf32>
    %103 = arith.mulf %72, %70 : vector<64x1xf32>
    %104 = vector.extract_strided_slice %71 {offsets = [5, 0], sizes = [1, 32], strides = [1, 1]} : vector<24x32xf32> to vector<1x32xf32>
    %105 = vector.broadcast %103 : vector<64x1xf32> to vector<64x32xf32>
    %106 = vector.broadcast %104 : vector<1x32xf32> to vector<64x32xf32>
    %107 = arith.mulf %105, %106 : vector<64x32xf32>
    %108 = arith.addf %102, %107 : vector<64x32xf32>
    %109 = arith.mulf %73, %68 : vector<64x1xf32>
    %110 = vector.extract_strided_slice %71 {offsets = [6, 0], sizes = [1, 32], strides = [1, 1]} : vector<24x32xf32> to vector<1x32xf32>
    %111 = vector.broadcast %109 : vector<64x1xf32> to vector<64x32xf32>
    %112 = vector.broadcast %110 : vector<1x32xf32> to vector<64x32xf32>
    %113 = arith.mulf %111, %112 : vector<64x32xf32>
    %114 = arith.addf %108, %113 : vector<64x32xf32>
    %115 = arith.mulf %73, %69 : vector<64x1xf32>
    %116 = vector.extract_strided_slice %71 {offsets = [7, 0], sizes = [1, 32], strides = [1, 1]} : vector<24x32xf32> to vector<1x32xf32>
    %117 = vector.broadcast %115 : vector<64x1xf32> to vector<64x32xf32>
    %118 = vector.broadcast %116 : vector<1x32xf32> to vector<64x32xf32>
    %119 = arith.mulf %117, %118 : vector<64x32xf32>
    %120 = arith.addf %114, %119 : vector<64x32xf32>
    %121 = arith.mulf %73, %70 : vector<64x1xf32>
    %122 = vector.extract_strided_slice %71 {offsets = [8, 0], sizes = [1, 32], strides = [1, 1]} : vector<24x32xf32> to vector<1x32xf32>
    %123 = vector.broadcast %121 : vector<64x1xf32> to vector<64x32xf32>
    %124 = vector.broadcast %122 : vector<1x32xf32> to vector<64x32xf32>
    %125 = arith.mulf %123, %124 : vector<64x32xf32>
    %126 = arith.addf %120, %125 : vector<64x32xf32>
    %127 = arith.mulf %74, %68 : vector<64x1xf32>
    %128 = vector.extract_strided_slice %71 {offsets = [9, 0], sizes = [1, 32], strides = [1, 1]} : vector<24x32xf32> to vector<1x32xf32>
    %129 = vector.broadcast %127 : vector<64x1xf32> to vector<64x32xf32>
    %130 = vector.broadcast %128 : vector<1x32xf32> to vector<64x32xf32>
    %131 = arith.mulf %129, %130 : vector<64x32xf32>
    %132 = arith.addf %126, %131 : vector<64x32xf32>
    %133 = arith.mulf %74, %69 : vector<64x1xf32>
    %134 = vector.extract_strided_slice %71 {offsets = [10, 0], sizes = [1, 32], strides = [1, 1]} : vector<24x32xf32> to vector<1x32xf32>
    %135 = vector.broadcast %133 : vector<64x1xf32> to vector<64x32xf32>
    %136 = vector.broadcast %134 : vector<1x32xf32> to vector<64x32xf32>
    %137 = arith.mulf %135, %136 : vector<64x32xf32>
    %138 = arith.addf %132, %137 : vector<64x32xf32>
    %139 = arith.mulf %74, %70 : vector<64x1xf32>
    %140 = vector.extract_strided_slice %71 {offsets = [11, 0], sizes = [1, 32], strides = [1, 1]} : vector<24x32xf32> to vector<1x32xf32>
    %141 = vector.broadcast %139 : vector<64x1xf32> to vector<64x32xf32>
    %142 = vector.broadcast %140 : vector<1x32xf32> to vector<64x32xf32>
    %143 = arith.mulf %141, %142 : vector<64x32xf32>
    %144 = arith.addf %138, %143 : vector<64x32xf32>
    %c0_24 = arith.constant 0 : index
    %c0_25 = arith.constant 0 : index
    %c0_26 = arith.constant 0 : index
    %145 = vector.load %arg4[%c0_24, %c0_25, %c0_26] : memref<1x64x32xf32, #tpu.memory_space<vmem>>, vector<1x64x32xf32>
    %146 = vector.shape_cast %145 : vector<1x64x32xf32> to vector<64x32xf32>
    %c0_27 = arith.constant 0 : index
    %c0_28 = arith.constant 0 : index
    %147 = vector.load %arg5[%c0_27, %c0_28] : memref<32x96xf32, #tpu.memory_space<vmem>>, vector<32x96xf32>
    %cst_29 = arith.constant dense<0.000000e+00> : vector<64x96xf32>
    %148 = tpu.matmul %146, %147, %cst_29 {dimension_numbers = #tpu.dot_dimension_numbers<[1], [0], [0], [1], [0, 0, 1, 1], [], []>} : vector<64x32xf32>, vector<32x96xf32>, vector<64x96xf32> -> vector<64x96xf32>
    %149 = vector.extract_strided_slice %148 {offsets = [0, 0], sizes = [64, 32], strides = [1, 1]} : vector<64x96xf32> to vector<64x32xf32>
    %150 = arith.addf %149, %144 : vector<64x32xf32>
    %151 = vector.extract_strided_slice %71 {offsets = [17, 0], sizes = [1, 32], strides = [1, 1]} : vector<24x32xf32> to vector<1x32xf32>
    %152 = vector.broadcast %151 : vector<1x32xf32> to vector<64x32xf32>
    %153 = arith.addf %150, %152 : vector<64x32xf32>
    %cst_30 = arith.constant 0.000000e+00 : f32
    %154 = vector.broadcast %cst_30 : f32 to vector<64x32xf32>
    %155 = arith.maximumf %153, %154 : vector<64x32xf32>
    %c0_31 = arith.constant 0 : index
    %c0_32 = arith.constant 0 : index
    %c0_33 = arith.constant 0 : index
    %156 = vector.load %arg6[%c0_31, %c0_32, %c0_33] : memref<3x32x32xf32, #tpu.memory_space<vmem>>, vector<1x32x32xf32>
    %157 = vector.shape_cast %156 : vector<1x32x32xf32> to vector<32x32xf32>
    %cst_34 = arith.constant dense<0.000000e+00> : vector<64x32xf32>
    %158 = tpu.matmul %155, %157, %cst_34 {dimension_numbers = #tpu.dot_dimension_numbers<[1], [0], [0], [1], [0, 0, 1, 1], [], []>} : vector<64x32xf32>, vector<32x32xf32>, vector<64x32xf32> -> vector<64x32xf32>
    %159 = arith.addf %155, %158 : vector<64x32xf32>
    %160 = vector.extract_strided_slice %71 {offsets = [20, 0], sizes = [1, 32], strides = [1, 1]} : vector<24x32xf32> to vector<1x32xf32>
    %161 = vector.broadcast %160 : vector<1x32xf32> to vector<64x32xf32>
    %162 = arith.addf %159, %161 : vector<64x32xf32>
    %cst_35 = arith.constant 0.000000e+00 : f32
    %163 = vector.broadcast %cst_35 : f32 to vector<64x32xf32>
    %164 = arith.maximumf %162, %163 : vector<64x32xf32>
    %165 = vector.extract_strided_slice %71 {offsets = [14, 0], sizes = [1, 32], strides = [1, 1]} : vector<24x32xf32> to vector<1x32xf32>
    %166 = vector.broadcast %165 : vector<1x32xf32> to vector<64x32xf32>
    %167 = arith.mulf %164, %166 : vector<64x32xf32>
    %cst_36 = arith.constant dense<0.000000e+00> : vector<64xf32>
    %168 = vector.multi_reduction <add>, %167, %cst_36 [1] : vector<64x32xf32> to vector<64xf32>
    %169 = vector.shape_cast %168 : vector<64xf32> to vector<64x1xf32>
    %170 = vector.extract_strided_slice %71 {offsets = [23, 0], sizes = [1, 1], strides = [1, 1]} : vector<24x32xf32> to vector<1x1xf32>
    %171 = vector.broadcast %170 : vector<1x1xf32> to vector<64x1xf32>
    %172 = arith.addf %169, %171 : vector<64x1xf32>
    %173 = vector.extract_strided_slice %148 {offsets = [0, 32], sizes = [64, 32], strides = [1, 1]} : vector<64x96xf32> to vector<64x32xf32>
    %174 = vector.extract_strided_slice %71 {offsets = [12, 0], sizes = [1, 32], strides = [1, 1]} : vector<24x32xf32> to vector<1x32xf32>
    %175 = vector.broadcast %172 : vector<64x1xf32> to vector<64x32xf32>
    %176 = vector.broadcast %174 : vector<1x32xf32> to vector<64x32xf32>
    %177 = arith.mulf %175, %176 : vector<64x32xf32>
    %178 = arith.addf %173, %177 : vector<64x32xf32>
    %179 = vector.extract_strided_slice %71 {offsets = [18, 0], sizes = [1, 32], strides = [1, 1]} : vector<24x32xf32> to vector<1x32xf32>
    %180 = vector.broadcast %179 : vector<1x32xf32> to vector<64x32xf32>
    %181 = arith.addf %178, %180 : vector<64x32xf32>
    %cst_37 = arith.constant 0.000000e+00 : f32
    %182 = vector.broadcast %cst_37 : f32 to vector<64x32xf32>
    %183 = arith.maximumf %181, %182 : vector<64x32xf32>
    %c1 = arith.constant 1 : index
    %c0_38 = arith.constant 0 : index
    %c0_39 = arith.constant 0 : index
    %184 = vector.load %arg6[%c1, %c0_38, %c0_39] : memref<3x32x32xf32, #tpu.memory_space<vmem>>, vector<1x32x32xf32>
    %185 = vector.shape_cast %184 : vector<1x32x32xf32> to vector<32x32xf32>
    %cst_40 = arith.constant dense<0.000000e+00> : vector<64x32xf32>
    %186 = tpu.matmul %183, %185, %cst_40 {dimension_numbers = #tpu.dot_dimension_numbers<[1], [0], [0], [1], [0, 0, 1, 1], [], []>} : vector<64x32xf32>, vector<32x32xf32>, vector<64x32xf32> -> vector<64x32xf32>
    %187 = arith.addf %183, %186 : vector<64x32xf32>
    %188 = vector.extract_strided_slice %71 {offsets = [21, 0], sizes = [1, 32], strides = [1, 1]} : vector<24x32xf32> to vector<1x32xf32>
    %189 = vector.broadcast %188 : vector<1x32xf32> to vector<64x32xf32>
    %190 = arith.addf %187, %189 : vector<64x32xf32>
    %cst_41 = arith.constant 0.000000e+00 : f32
    %191 = vector.broadcast %cst_41 : f32 to vector<64x32xf32>
    %192 = arith.maximumf %190, %191 : vector<64x32xf32>
    %193 = vector.extract_strided_slice %71 {offsets = [15, 0], sizes = [1, 32], strides = [1, 1]} : vector<24x32xf32> to vector<1x32xf32>
    %194 = vector.broadcast %193 : vector<1x32xf32> to vector<64x32xf32>
    %195 = arith.mulf %192, %194 : vector<64x32xf32>
    %cst_42 = arith.constant dense<0.000000e+00> : vector<64xf32>
    %196 = vector.multi_reduction <add>, %195, %cst_42 [1] : vector<64x32xf32> to vector<64xf32>
    %197 = vector.shape_cast %196 : vector<64xf32> to vector<64x1xf32>
    %198 = vector.extract_strided_slice %71 {offsets = [23, 1], sizes = [1, 1], strides = [1, 1]} : vector<24x32xf32> to vector<1x1xf32>
    %199 = vector.broadcast %198 : vector<1x1xf32> to vector<64x1xf32>
    %200 = arith.addf %197, %199 : vector<64x1xf32>
    %201 = arith.addf %172, %200 : vector<64x1xf32>
    %202 = vector.extract_strided_slice %148 {offsets = [0, 64], sizes = [64, 32], strides = [1, 1]} : vector<64x96xf32> to vector<64x32xf32>
    %203 = vector.extract_strided_slice %71 {offsets = [13, 0], sizes = [1, 32], strides = [1, 1]} : vector<24x32xf32> to vector<1x32xf32>
    %204 = vector.broadcast %201 : vector<64x1xf32> to vector<64x32xf32>
    %205 = vector.broadcast %203 : vector<1x32xf32> to vector<64x32xf32>
    %206 = arith.mulf %204, %205 : vector<64x32xf32>
    %207 = arith.addf %202, %206 : vector<64x32xf32>
    %208 = vector.extract_strided_slice %71 {offsets = [19, 0], sizes = [1, 32], strides = [1, 1]} : vector<24x32xf32> to vector<1x32xf32>
    %209 = vector.broadcast %208 : vector<1x32xf32> to vector<64x32xf32>
    %210 = arith.addf %207, %209 : vector<64x32xf32>
    %cst_43 = arith.constant 0.000000e+00 : f32
    %211 = vector.broadcast %cst_43 : f32 to vector<64x32xf32>
    %212 = arith.maximumf %210, %211 : vector<64x32xf32>
    %c2 = arith.constant 2 : index
    %c0_44 = arith.constant 0 : index
    %c0_45 = arith.constant 0 : index
    %213 = vector.load %arg6[%c2, %c0_44, %c0_45] : memref<3x32x32xf32, #tpu.memory_space<vmem>>, vector<1x32x32xf32>
    %214 = vector.shape_cast %213 : vector<1x32x32xf32> to vector<32x32xf32>
    %cst_46 = arith.constant dense<0.000000e+00> : vector<64x32xf32>
    %215 = tpu.matmul %212, %214, %cst_46 {dimension_numbers = #tpu.dot_dimension_numbers<[1], [0], [0], [1], [0, 0, 1, 1], [], []>} : vector<64x32xf32>, vector<32x32xf32>, vector<64x32xf32> -> vector<64x32xf32>
    %216 = arith.addf %212, %215 : vector<64x32xf32>
    %217 = vector.extract_strided_slice %71 {offsets = [22, 0], sizes = [1, 32], strides = [1, 1]} : vector<24x32xf32> to vector<1x32xf32>
    %218 = vector.broadcast %217 : vector<1x32xf32> to vector<64x32xf32>
    %219 = arith.addf %216, %218 : vector<64x32xf32>
    %cst_47 = arith.constant 0.000000e+00 : f32
    %220 = vector.broadcast %cst_47 : f32 to vector<64x32xf32>
    %221 = arith.maximumf %219, %220 : vector<64x32xf32>
    %222 = vector.extract_strided_slice %71 {offsets = [16, 0], sizes = [1, 32], strides = [1, 1]} : vector<24x32xf32> to vector<1x32xf32>
    %223 = vector.broadcast %222 : vector<1x32xf32> to vector<64x32xf32>
    %224 = arith.mulf %221, %223 : vector<64x32xf32>
    %cst_48 = arith.constant dense<0.000000e+00> : vector<64xf32>
    %225 = vector.multi_reduction <add>, %224, %cst_48 [1] : vector<64x32xf32> to vector<64xf32>
    %226 = vector.shape_cast %225 : vector<64xf32> to vector<64x1xf32>
    %227 = vector.extract_strided_slice %71 {offsets = [23, 2], sizes = [1, 1], strides = [1, 1]} : vector<24x32xf32> to vector<1x1xf32>
    %228 = vector.broadcast %227 : vector<1x1xf32> to vector<64x1xf32>
    %229 = arith.addf %226, %228 : vector<64x1xf32>
    %230 = arith.addf %201, %229 : vector<64x1xf32>
    %231 = tpu.transpose %230, [1, 0] : vector<64x1xf32> -> vector<1x64xf32>
    %232 = vector.shape_cast %231 : vector<1x64xf32> to vector<1x1x64xf32>
    %c0_49 = arith.constant 0 : index
    %c0_50 = arith.constant 0 : index
    %c0_51 = arith.constant 0 : index
    %233 = vector.load %arg8[%c0_49, %c0_50, %c0_51] : memref<1x1x64xf32, #tpu.memory_space<vmem>>, vector<1x1x64xf32>
    tpu.vector_store %arg8[%c0_49, %c0_50, %c0_51], %232 {strides = array<i32>} : memref<1x1x64xf32, #tpu.memory_space<vmem>>, vector<1x1x64xf32>,
    return
  }
  func.func @transform_0(%arg0: i32, %arg1: i32) -> (i32, i32, i32, i32) {
    %c0_i32 = arith.constant 0 : i32
    %c0_i32_0 = arith.constant 0 : i32
    %c0_i32_1 = arith.constant 0 : i32
    %c0_i32_2 = arith.constant 0 : i32
    return %arg0, %c0_i32, %c0_i32_0, %c0_i32_1 : i32, i32, i32, i32
  }
  func.func @transform_1(%arg0: i32, %arg1: i32) -> (i32, i32, i32) {
    %c0_i32 = arith.constant 0 : i32
    %c0_i32_0 = arith.constant 0 : i32
    return %arg0, %arg1, %c0_i32 : i32, i32, i32
  }
  func.func @transform_2(%arg0: i32, %arg1: i32) -> (i32, i32, i32) {
    %c0_i32 = arith.constant 0 : i32
    %c0_i32_0 = arith.constant 0 : i32
    return %arg0, %arg1, %c0_i32 : i32, i32, i32
  }
  func.func @transform_3(%arg0: i32, %arg1: i32) -> (i32, i32) {
    %c0_i32 = arith.constant 0 : i32
    %c0_i32_0 = arith.constant 0 : i32
    %c0_i32_1 = arith.constant 0 : i32
    return %c0_i32, %c0_i32_0 : i32, i32
  }
  func.func @transform_4(%arg0: i32, %arg1: i32) -> (i32, i32, i32) {
    %c0_i32 = arith.constant 0 : i32
    %c0_i32_0 = arith.constant 0 : i32
    %c0_i32_1 = arith.constant 0 : i32
    %c0_i32_2 = arith.constant 0 : i32
    return %c0_i32, %c0_i32_0, %c0_i32_1 : i32, i32, i32
  }
  func.func @transform_5(%arg0: i32, %arg1: i32) -> (i32, i32) {
    %c0_i32 = arith.constant 0 : i32
    %c0_i32_0 = arith.constant 0 : i32
    %c0_i32_1 = arith.constant 0 : i32
    return %c0_i32, %c0_i32_0 : i32, i32
  }
  func.func @transform_6(%arg0: i32, %arg1: i32) -> (i32, i32, i32) {
    %c0_i32 = arith.constant 0 : i32
    %c0_i32_0 = arith.constant 0 : i32
    return %arg0, %c0_i32, %arg1 : i32, i32, i32
  }
}

</mosaic_0001>

<bundles_post_ra>
// kernel: tpu_custom_call.1
= control target key start
LH: loop header
LB: loop body
LE: loop exit
PB: predicated region body
PF: predicated region fallthrough
CT: control target
= control target key end

     0   :  { %11 = vsyncpa [#allocation3], 0  ;;  %s4404_s0 = inlined_call_operand.vmem [shape: f32[2,1,3,64], index: 0, kind: input, shape index: {}]   ;;  %s4405_s1 = inlined_call_operand.vmem [shape: f32[2,64,3], index: 1, kind: input, shape index: {}]   ;;  %s4406_s2 = inlined_call_operand.vmem [shape: f32[2,64,32], index: 2, kind: input, shape index: {}]   ;;  %s4407_s3 = inlined_call_operand.vmem [shape: f32[32,96], index: 3, kind: input, shape index: {}]   ;;  %s4408_s4 = inlined_call_operand.vmem [shape: f32[3,32,32], index: 4, kind: input, shape index: {}]   ;;  %s4409_s5 = inlined_call_operand.vmem [shape: f32[24,32], index: 5, kind: input, shape index: {}]   ;;  %s4410_s6 = inlined_call_operand.hbm [shape: f32[2,1,64], index: 6, kind: output, shape index: {}]  }
   0x1   :  { %13 = vsyncpa [#allocation3 + $0x1], 0  ;;  %s2953_s21 = smov 0   ;;  %s2955_s22 = smov 0  }
   0x2   :  { %s2957_s23 = smov 0   ;;  %s2959_s24 = smov 0  }
   0x3   :  { %s2961_s25 = smov 0   ;;  %s2963_s26 = smov 0  }
   0x4 LB: > { %s2614_s27 = sadd.s32 4294967295, %s2907_s26   ;;  %s2615_s28 = sadd.s32 4294967294, %s2907_s26   ;;  %s2907_s26 = sphi %s2963_s26, %s19_s26   ;;  %s2903_s25 = sphi %s2961_s25, %s4466_s25   ;;  %s2899_s24 = sphi %s2959_s24, %s4465_s24   ;;  %s2895_s23 = sphi %s2957_s23, %s4464_s23   ;;  %s2891_s22 = sphi %s2955_s22, %s4463_s22   ;;  %s2887_s21 = sphi %s2953_s21, %s4462_s21  }
   0x5   : > { %s31_s29 = sadd.s32 1, %s2903_s25  ;;  %s185_s30 = sadd.s32 1, %s2895_s23 }
   0x6   : > { %p33_p0 = scmp.ge.s32.totalorder %s31_s29, 2  ;;  %p195_p1 = scmp.ne.s32.totalorder %s2895_s23, %s2891_s22 }
   0x7   : > { %p196_p2 = scmp.eq.s32.totalorder %s2614_s27, 1  ;;  %p201_p3 = scmp.ne.s32.totalorder %s2891_s22, %s2887_s21 }
   0x8   : > { %s4468_s29 = smov (%p33_p0, %s31_s29), 0  ;;  %p202_p5 = scmp.eq.s32.totalorder %s2615_s28, 1 }
   0x9   : > { %p2993_p4 = por %p196_p2, %p195_p1  ;;  %s180_s8 = ssub.s32 %s2903_s25, %s4468_s29 }
   0xa   : > { %p2618_p6 = scmp.ge.s32.totalorder %s2907_s26, 1  ;;  %p183_p7 = scmp.eq.s32.totalorder %s180_s8, 0 }
   0xb   : > { %p3000_p8 = por %p202_p5, %p201_p3  ;;  %p262_p9 = scmp.lt.s32.totalorder %s2907_s26, 3 }
   0xc   : > { %s3006_s10 = scalar_select %p183_p7, %s2895_s23, %s185_s30  }
   0xd   : > { %p263_p10 = pnand %p2618_p6, %p262_p9 }
   0xf   : > { %266 = sbr.rel (%p263_p10) target bundleno = 3290 (0xcda), region = 44 }
  0x14   : > { %p308_p11 = scmp.lt.s32.totalorder %s2899_s24, 1  ;;  %v4411_v0 = vmov 0   ;;  %vm436_vm0 = vcmask 1042432   ;;  %vm349_vm1 = vcmask 23552   ;;  %v4415_v18 = vmov 2   ;;  %s2915_s15 = smov 127  }
  0x15   : > { %2752 = vset.pattern.permute.xlu2 %v4411_v0  ;;  %2762 = vset.pattern.permute.xlu0 %v4415_v18  ;;  %v4413_v27 = vmov 1   ;;  %vm396_vm2 = vcmask 518144   ;;  %v374_v33 = vlaneseq  ;;  %vm524_vm8 = vcmask 523264   ;;  %s306_s17 = sand.u32 1, %s2891_s22  }
  0x16   : > { %s3011_s11 = scalar_select %p308_p11, %s2899_s24, 1  ;;  %2753 = vset.pattern.permute.xlu1 %v4415_v18 }
  0x17   : > { %v3122_v35 = vshrl.u32 %v374_v33, 7  ;;  %v3125_v39 = vand.u32 127, %v374_v33  ;;  %s2501_s27 = scalar_lea.sflag [#allocation3], %s306_s17 }
  0x18   : > { %s2619_s12 = sshll.u32 %s3011_s11, 2  ;;  %s2683_s13 = sshll.u32 %s3011_s11, 6 }
  0x19   : > { %s311_s16 = scalar_lea.vmem %s4404_s0, %s2619_s12  ;;  %s3023_s19 = scalar_lea.vmem %s4405_s1, %s2683_s13  ;;  %v377_v38 = vadd.s32 16, %v3122_v35  ;;  %vm505_vm4 = vcmp.ge.s32.totalorder %v3125_v39, 64  ;;  %vm497_vm5 = vcmp.eq.s32.totalorder %v3125_v39, %v3122_v35  ;;  %v379_v51 = vadd.s32 32, %v3122_v35 }
  0x1a   : > { %v3025_v1 = vld [vmem:[%s311_s16] sm:$0x7]  ;;  %v3031_v3 = vld [vmem:[%s3023_s19 + $0x10] sm:$0xff]  ;;  %v3058_v9 = vld [vmem:[%s3023_s19 + $0x28] sm:$0xff]  ;;  %v376_v58 = vadd.s32 8, %v3122_v35  ;;  %v381_v60 = vadd.s32 48, %v3122_v35  ;;  %s3423_s16 = scalar_lea.vmem %s4406_s2, %s2683_s13 }
  0x1b   : > { %v3028_v2 = vld [vmem:[%s3023_s19] sm:$0xff]  ;;  %2624 = vmatpush.msk.msra.mxu0 %vm436_vm0, %v3025_v1  ;;  %2685 = vmatpush.msk.msra.mxu1 %vm436_vm0, %v3025_v1  ;;  %v3041_v5 = vld [vmem:[%s3023_s19 + $0x30] sm:$0xff]  ;;  %v343_v7 = vmul.f32 %v3031_v3, %v3031_v3  ;;  %v336_v10 = vld [vmem:[%s3023_s19 + $0x18] sm:$0xff]  ;;  %v346_v15 = vmul.f32 %v3058_v9, %v3058_v9  ;;  %v395_v28 = vmul.f32 %v3025_v1, %v3025_v1  ;;  %s2914_s13 = smov 96   ;;  %s2916_s11 = smov 64  }
  0x1c   : > { %v3038_v4 = vld [vmem:[%s3023_s19 + $0x20] sm:$0xff]  ;;  %2625 = vmatmul.msk.f32.vlgmr.msra.gmra.mxu0 %vm349_vm1, %v3028_v2  ;;  %2627 = vmatmul.msk.f32.vlgmr.msra.gmra.mxu1 %vm349_vm1, %v3031_v3  ;;  %v341_v8 = vmul.f32 %v3028_v2, %v3028_v2  ;;  %v334_v14 = vld [vmem:[%s3023_s19 + $0x8] sm:$0xff]  ;;  %v344_v16 = vmul.f32 %v336_v10, %v336_v10  ;;  %v3074_v19 = vld [vmem:[%s3023_s19 + $0x38] sm:$0xff]  ;;  %v347_v23 = vmul.f32 %v3041_v5, %v3041_v5 }
  0x1d   : > { %v345_v6 = vmul.f32 %v3038_v4, %v3038_v4  ;;  %2686 = vmatpush.msk.msra.mxu2 %vm436_vm0, %v3025_v1  ;;  %2687 = vmatpush.msk.msra.mxu3 %vm436_vm0, %v3025_v1  ;;  %v356_v12 = vsel %vm349_vm1, %v343_v7, 0.0  ;;  %v342_v17 = vmul.f32 %v334_v14, %v334_v14  ;;  %v365_v20 = vsel %vm349_vm1, %v346_v15, 0.0  ;;  %vm508_vm7 = vmor %vm497_vm5, %vm505_vm4 }
  0x1e   : > { %v350_v13 = vsel %vm349_vm1, %v341_v8, 0.0  ;;  %2629 = vmatmul.msk.f32.vlgmr.msra.gmra.mxu2 %vm349_vm1, %v3038_v4  ;;  %2631 = vmatmul.msk.f32.vlgmr.msra.gmra.mxu3 %vm349_vm1, %v3041_v5  ;;  %v359_v21 = vsel %vm349_vm1, %v344_v16, 0.0  ;;  %v348_v24 = vmul.f32 %v3074_v19, %v3074_v19  ;;  %v368_v25 = vsel %vm349_vm1, %v347_v23, 0.0 }
  0x1f   : > { %v362_v11 = vsel %vm349_vm1, %v345_v6, 0.0  ;;  %357 = vadd.xlane.f32.xlu1 %v356_v12  ;;  %351 = vadd.xlane.f32.xlu0 %v350_v13  ;;  %v353_v22 = vsel %vm349_vm1, %v342_v17, 0.0  ;;  %v397_v29 = vsel %vm396_vm2, %v395_v28, 0.0  ;;  %vm499_vm3 = vcmp.eq.s32.totalorder %v3125_v39, %v377_v38 }
  0x20   : > { %363 = vadd.xlane.f32.xlu2 %v362_v11  ;;  %v371_v26 = vsel %vm349_vm1, %v348_v24, 0.0  ;;  %v398_v30 = vrot.slane %v397_v29, 4  ;;  %vm510_vm6 = vmor %vm499_vm3, %vm505_vm4  ;;  %vm501_vm9 = vcmp.eq.s32.totalorder %v3125_v39, %v379_v51  ;;  %vm498_vm11 = vcmp.eq.s32.totalorder %v3125_v39, %v376_v58 }
  0x21   : > { %vm512_vm10 = vmor %vm501_vm9, %vm505_vm4  ;;  %vm503_vm12 = vcmp.eq.s32.totalorder %v3125_v39, %v381_v60 }
  0x22   : > { %v399_v31 = vadd.f32 %v398_v30, %v397_v29  ;;  %vm509_vm13 = vmor %vm498_vm11, %vm505_vm4 }
  0x23   : > { %vm514_vm14 = vmor %vm503_vm12, %vm505_vm4 }
  0x24   : > { %2626 = vmatmul.msk.f32.gmra.mxu0 %vm349_vm1, %v334_v14  ;;  %2628 = vmatmul.msk.f32.gmra.mxu1 %vm349_vm1, %v336_v10  ;;  %v400_v32 = vrot.slane %v399_v31, 2 }
  0x26   : > { %2632 = vmatmul.msk.f32.gmra.mxu3 %vm349_vm1, %v3074_v19  ;;  %2630 = vmatmul.msk.f32.gmra.mxu2 %vm349_vm1, %v3058_v9  ;;  %v401_v34 = vadd.f32 %v400_v32, %v399_v31  ;;  %v382_v32 = vadd.s32 56, %v3122_v35 }
  0x27   : > { %360 = vadd.xlane.f32.xlu1 %v359_v21  ;;  %354 = vadd.xlane.f32.xlu0 %v353_v22  ;;  %v378_v21 = vadd.s32 24, %v3122_v35 }
  0x28   : > { %366 = vadd.xlane.f32.xlu2 %v365_v20  ;;  %v402_v36 = vrot.slane %v401_v34, 1  ;;  %vm504_vm1 = vcmp.eq.s32.totalorder %v3125_v39, %v382_v32 }
  0x29   : > { %vm500_vm15 = vcmp.eq.s32.totalorder %v3125_v39, %v378_v21  ;;  %vm515_vm2 = vmor %vm504_vm1, %vm505_vm4 }
  0x2a   : > { %v3127_v40 = vadd.f32 %v402_v36, %v401_v34  ;;  %vm511_vm0 = vmor %vm500_vm15, %vm505_vm4 }
  0x2f   : > { %369 = vadd.xlane.f32.xlu1 %v368_v25  ;;  %372 = vadd.xlane.f32.xlu0 %v371_v26 }
  0x40   : > { %844 = vperm.xlu2 %2752, %v3028_v2  }
  0x43   : > { %962 = vperm.xlu0 %2762, %v3058_v9  }
  0x48   : > { %2756 = vset.pattern.permute.xlu2 %v4415_v18  ;;  %942 = vperm.xlu1 %2753, %v3028_v2  }
  0x49   : > { %946 = vperm.xlu2 %2756, %v334_v14  }
  0x4b   : > { %2763 = vset.pattern.permute.xlu0 %v4411_v0 }
  0x4c   : > { %856 = vperm.xlu0 %2763, %v336_v10  }
  0x50   : > { %2754 = vset.pattern.permute.xlu1 %v4411_v0 }
  0x51   : > { %950 = vperm.xlu2 %2756, %v3031_v3   ;;  %848 = vperm.xlu1 %2754, %v334_v14  }
  0x54   : > { %860 = vperm.xlu0 %2763, %v3038_v4  }
  0x59   : > { %954 = vperm.xlu2 %2756, %v336_v10   ;;  %2755 = vset.pattern.permute.xlu1 %v4413_v27 }
  0x5a   : > { %897 = vperm.xlu1 %2755, %v334_v14  }
  0x5c   : > { %868 = vperm.xlu0 %2763, %v3041_v5  }
  0x61   : > { %2759 = vset.pattern.permute.xlu2 %v4413_v27 }
  0x62   : > { %909 = vperm.xlu2 %2759, %v3038_v4   ;;  %2757 = vset.pattern.permute.xlu1 %v4411_v0 }
  0x63   : > { %852 = vperm.xlu1 %2757, %v3031_v3  }
  0x64   : > { %2764 = vset.pattern.permute.xlu0 %v4413_v27 }
  0x65   : > { %893 = vperm.xlu0 %2764, %v3028_v2  }
  0x6a   : > { %2760 = vset.pattern.permute.xlu2 %v4415_v18 }
  0x6b   : > { %958 = vperm.xlu2 %2760, %v3038_v4   ;;  %2758 = vset.pattern.permute.xlu1 %v4413_v27 }
  0x6c   : > { %901 = vperm.xlu1 %2758, %v3031_v3  }
  0x6d   : > { %905 = vperm.xlu0 %2764, %v336_v10  }
  0x73   : > { %2765 = vset.pattern.permute.xlu2 %v4413_v27 }
  0x74   : > { %917 = vperm.xlu2 %2765, %v3041_v5   ;;  %2761 = vset.pattern.permute.xlu1 %v4411_v0 }
  0x75   : > { %864 = vperm.xlu1 %2761, %v3058_v9  }
  0x7c   : > { %921 = vperm.xlu2 %2765, %v3074_v19  }
  0x7d   : > { %2766 = vset.pattern.permute.xlu1 %v4415_v18 }
  0x84   : > { %2768 = vset.pattern.permute.xlu2 %v4415_v18 }
  0x85   : > { %970 = vperm.xlu2 %2768, %v3074_v19  }
  0x8d   : > { %2769 = vset.pattern.permute.xlu2 %v4411_v0 }
  0x92   : > { %v358_v37 = vpop.xlane.xlu1 %357  ;;  %v352_v41 = vpop.xlane.xlu0 %351 }
  0x93   : > { %v406_v42 = vadd.f32 %v3127_v40, %v358_v37  ;;  %v404_v43 = vadd.f32 %v3127_v40, %v352_v41  ;;  %v364_v55 = vpop.xlane.xlu2 %363 }
  0x94   : > { %v408_v59 = vadd.f32 %v3127_v40, %v364_v55 }
  0x99   : > { %v457_v44 = vpop.f32.mrf.mxu0  ;;  %v463_v45 = vpop.f32.mrf.mxu1 }
  0x9a   : > { %v481_v46 = vmul.f32 2.0, %v457_v44  ;;  %v483_v47 = vmul.f32 2.0, %v463_v45  ;;  %v361_v48 = vpop.xlane.xlu1 %360  ;;  %v355_v54 = vpop.xlane.xlu0 %354  ;;  %v380_v45 = vadd.s32 40, %v3122_v35 }
  0x9b   : > { %v405_v62 = vadd.f32 %v3127_v40, %v355_v54  ;;  %v407_v22 = vadd.f32 %v3127_v40, %v361_v48  ;;  %v367_v37 = vpop.xlane.xlu2 %366 }
  0x9c   : > { %v489_v49 = vsub.f32 %v404_v43, %v481_v46  ;;  %v491_v50 = vsub.f32 %v406_v42, %v483_v47  ;;  %v409_v38 = vadd.f32 %v3127_v40, %v367_v37  ;;  %vm502_vm3 = vcmp.eq.s32.totalorder %v3125_v39, %v380_v45 }
  0x9d   : > { %vm513_vm5 = vmor %vm502_vm3, %vm505_vm4 }
  0x9e   : > { %v3140_v52 = vsel %vm510_vm6, inf, %v491_v50  ;;  %v3142_v53 = vsel %vm508_vm7, inf, %v489_v49 }
  0x9f   : > { %v531_v56 = vsel %vm524_vm8, %v3140_v52, inf  ;;  %v525_v57 = vsel %vm524_vm8, %v3142_v53, inf }
  0xa0   : > { %532 = vmin.xlane.f32.xlu1 %v531_v56  ;;  %526 = vmin.xlane.f32.xlu0 %v525_v57 }
  0xa1   : > { %v469_v61 = vpop.f32.mrf.mxu2  ;;  %v460_v63 = vpop.f32.mrf.mxu0 }
  0xa2   : > { %v485_v6 = vmul.f32 2.0, %v469_v61  ;;  %v482_v7 = vmul.f32 2.0, %v460_v63  ;;  %v475_v8 = vpop.f32.mrf.mxu3  ;;  %v370_v11 = vpop.xlane.xlu1 %369 }
  0xa3   : > { %v487_v10 = vmul.f32 2.0, %v475_v8  ;;  %v410_v13 = vadd.f32 %v3127_v40, %v370_v11  ;;  %v466_v15 = vpop.f32.mrf.mxu1  ;;  %v373_v30 = vpop.xlane.xlu0 %372 }
  0xa4   : > { %v493_v12 = vsub.f32 %v408_v59, %v485_v6  ;;  %v490_v14 = vsub.f32 %v405_v62, %v482_v7  ;;  %v484_v23 = vmul.f32 2.0, %v466_v15  ;;  %v411_v33 = vadd.f32 %v3127_v40, %v373_v30  ;;  %v3203_v35 = vpop.permute.xlu2 %844 }
  0xa5   : > { %v495_v17 = vsub.f32 %v410_v13, %v487_v10 }
  0xa6   : > { %v3158_v16 = vsel %vm512_vm10, inf, %v493_v12  ;;  %v3168_v24 = vsel %vm509_vm13, inf, %v490_v14  ;;  %v492_v28 = vsub.f32 %v407_v22, %v484_v23 }
  0xa7   : > { %v537_v20 = vsel %vm524_vm8, %v3158_v16, inf  ;;  %v3170_v25 = vsel %vm514_vm14, inf, %v495_v17  ;;  %v528_v26 = vsel %vm524_vm8, %v3168_v24, inf }
  0xa8   : > { %538 = vmin.xlane.f32.xlu0 %v537_v20  ;;  %v543_v29 = vsel %vm524_vm8, %v3170_v25, inf  ;;  %v3181_v36 = vsel %vm511_vm0, inf, %v492_v28 }
  0xa9   : > { %v534_v41 = vsel %vm524_vm8, %v3181_v36, inf  ;;  %v472_v43 = vpop.f32.mrf.mxu2 }
  0xaa   : > { %v478_v31 = vpop.f32.mrf.mxu3  ;;  %v486_v44 = vmul.f32 2.0, %v472_v43 }
  0xab   : > { %v488_v34 = vmul.f32 2.0, %v478_v31 }
  0xac   : > { %v494_v46 = vsub.f32 %v409_v38, %v486_v44 }
  0xad   : > { %v496_v42 = vsub.f32 %v411_v33, %v488_v34 }
  0xae   : > { %529 = vmin.xlane.f32.xlu2 %v528_v26  ;;  %v3196_v40 = vsel %vm513_vm5, inf, %v494_v46 }
  0xaf   : > { %v3192_v47 = vsel %vm515_vm2, inf, %v496_v42 }
  0xb0   : > { %544 = vmin.xlane.f32.xlu0 %v543_v29  ;;  %v546_v48 = vsel %vm524_vm8, %v3192_v47, inf }
  0xb5   : > { %v3207_v49 = vpop.permute.xlu0 %962 }
  0xb6   : > { %535 = vmin.xlane.f32.xlu2 %v534_v41  ;;  %4422 = vst [vmem:[#allocation5_spill] sm:$0xff] %v3207_v49 }
  0xb9   : > { %966 = vperm.xlu1 %2766, %v3041_v5   ;;  %v3205_v5 = vpop.permute.xlu2 %946 }
  0xba   : > { %v3209_v50 = vpop.permute.xlu1 %942 }
  0xbe   : > { %547 = vmin.xlane.f32.xlu2 %v546_v48  ;;  %v3213_v54 = vpop.permute.xlu0 %856 }
  0xc1   : > { %2767 = vset.pattern.permute.xlu1 %v4411_v0  ;;  %v3211_v51 = vpop.permute.xlu2 %950 }
  0xc2   : > { %872 = vperm.xlu1 %2767, %v3074_v19   ;;  %v540_v19 = vsel %vm524_vm8, %v3196_v40, inf }
  0xc3   : > { %v3215_v55 = vpop.permute.xlu1 %848 }
  0xc4   : > { %913 = vperm.xlu0 %2764, %v3058_v9  }
  0xc6   : > { %v3221_v9 = vpop.permute.xlu0 %860 }
  0xc9   : > { %v3217_v56 = vpop.permute.xlu2 %954 }
  0xcc   : > { %v3223_v57 = vpop.permute.xlu1 %897 }
  0xce   : > { %v3227_v59 = vpop.permute.xlu0 %868 }
  0xcf   : > { %4423 = vst [vmem:[#allocation6_spill] sm:$0xff] %v3227_v59 }
  0xd1   : > { %v3225_v58 = vpop.permute.xlu2 %909 }
  0xd5   : > { %v3229_v60 = vpop.permute.xlu1 %852 }
  0xd7   : > { %v3233_v62 = vpop.permute.xlu0 %893 }
  0xd9   : > { %v3231_v61 = vpop.permute.xlu2 %958 }
  0xde   : > { %v3235_v63 = vpop.permute.xlu1 %901 }
  0xdf   : > { %v3239_v7 = vpop.permute.xlu0 %905 }
  0xe1   : > { %v3237_v6 = vpop.permute.xlu2 %917 }
  0xe2   : > { %4424 = vst [vmem:[#allocation7_spill] sm:$0xff] %v3237_v6 }
  0xe7   : > { %v3241_v8 = vpop.permute.xlu1 %864 }
  0xe9   : > { %v3243_v10 = vpop.permute.xlu2 %921 }
  0xea   : > { %4425 = vst [vmem:[#allocation8_spill] sm:$0xff] %v3243_v10 }
  0xec   : > { %541 = vmin.xlane.f32.xlu1 %v540_v19 }
  0xf1   : > { %v3255_v15 = vpop.permute.xlu2 %970 }
  0xf2   : > { %4426 = vst [vmem:[#allocation9_spill] sm:$0xff] %v3255_v15 }
 0x113   : > { %v3245_v11 = vpop.xlane.xlu1 %532  ;;  %v3247_v12 = vpop.xlane.xlu0 %526 }
 0x114   : > { %vm551_vm4 = vcmp.le.f32.partialorder %v3140_v52, %v3245_v11  ;;  %vm549_vm6 = vcmp.le.f32.partialorder %v3142_v53, %v3247_v12 }
 0x115   : > { %v559_v13 = vsel %vm551_vm4, %v3125_v39, 64  ;;  %v557_v14 = vsel %vm549_vm6, %v3125_v39, 64 }
 0x116   : > { %v595_v17 = vsel %vm524_vm8, %v559_v13, 2147483647  ;;  %v565_v20 = vsel %vm524_vm8, %v557_v14, 2147483647 }
 0x117   : > { %v597_v21 = vshra.s32 %v595_v17, 16  ;;  %v567_v22 = vshra.s32 %v565_v20, 16 }
 0x119   : > { %v599_v23 = vcvt.s32.f32 %v597_v21  ;;  %v569_v26 = vcvt.s32.f32 %v567_v22 }
 0x11b   : > { %600 = vmin.xlane.f32.xlu0 %v599_v23  ;;  %570 = vmin.xlane.f32.xlu2 %v569_v26  ;;  %v3259_v52 = vpop.xlane.xlu0 %538 }
 0x11c   : > { %vm553_vm7 = vcmp.le.f32.partialorder %v3158_v16, %v3259_v52 }
 0x11d   : > { %v561_v53 = vsel %vm553_vm7, %v3125_v39, 64 }
 0x11e   : > { %v625_v28 = vsel %vm524_vm8, %v561_v53, 2147483647 }
 0x11f   : > { %v627_v29 = vshra.s32 %v625_v28, 16 }
 0x121   : > { %v3265_v30 = vpop.xlane.xlu2 %529  ;;  %v629_v31 = vcvt.s32.f32 %v627_v29 }
 0x122   : > { %vm550_vm9 = vcmp.le.f32.partialorder %v3168_v24, %v3265_v30 }
 0x123   : > { %v558_v32 = vsel %vm550_vm9, %v3125_v39, 64  ;;  %630 = vmin.xlane.f32.xlu2 %v629_v31  ;;  %v3270_v33 = vpop.xlane.xlu0 %544 }
 0x124   : > { %v580_v34 = vsel %vm524_vm8, %v558_v32, 2147483647  ;;  %vm555_vm10 = vcmp.le.f32.partialorder %v3170_v25, %v3270_v33 }
 0x125   : > { %v582_v16 = vshra.s32 %v580_v34, 16  ;;  %v563_v37 = vsel %vm555_vm10, %v3125_v39, 64 }
 0x126   : > { %v655_v41 = vsel %vm524_vm8, %v563_v37, 2147483647 }
 0x127   : > { %v584_v38 = vcvt.s32.f32 %v582_v16  ;;  %v657_v42 = vshra.s32 %v655_v41, 16  ;;  %v656_v10 = vand.u32 65535, %v655_v41 }
 0x129   : > { %585 = vmin.xlane.f32.xlu1 %v584_v38  ;;  %v3277_v24 = vpop.xlane.xlu2 %535  ;;  %v659_v43 = vcvt.s32.f32 %v657_v42  ;;  %v566_v42 = vand.u32 65535, %v565_v20  ;;  %v658_v20 = vcvt.s32.f32 %v656_v10 }
 0x12a   : > { %vm552_vm11 = vcmp.le.f32.partialorder %v3181_v36, %v3277_v24 }
 0x12b   : > { %v560_v44 = vsel %vm552_vm11, %v3125_v39, 64  ;;  %660 = vmin.xlane.f32.xlu2 %v659_v43  ;;  %v3289_v21 = vpop.permute.xlu1 %966 }
 0x12c   : > { %v610_v45 = vsel %vm524_vm8, %v560_v44, 2147483647  ;;  %4427 = vst [vmem:[#allocation10_spill] sm:$0xff] %v3289_v21  ;;  %v596_v44 = vand.u32 65535, %v595_v17 }
 0x12d   : > { %v612_v25 = vshra.s32 %v610_v45, 16 }
 0x12e   : > { %v598_v0 = vcvt.s32.f32 %v596_v44 }
 0x12f   : > { %v614_v46 = vcvt.s32.f32 %v612_v25 }
 0x131   : > { %615 = vmin.xlane.f32.xlu1 %v614_v46  ;;  %v3283_v48 = vpop.xlane.xlu2 %547 }
 0x132   : > { %vm556_vm12 = vcmp.le.f32.partialorder %v3192_v47, %v3283_v48 }
 0x133   : > { %v564_v19 = vsel %vm556_vm12, %v3125_v39, 64 }
 0x134   : > { %v670_v13 = vsel %vm524_vm8, %v564_v19, 2147483647  ;;  %v3291_v22 = vpop.permute.xlu1 %872 }
 0x135   : > { %v672_v14 = vshra.s32 %v670_v13, 16  ;;  %4428 = vst [vmem:[#allocation11_spill] sm:$0xff] %v3291_v22 }
 0x136   : > { %v3299_v37 = vpop.permute.xlu0 %913 }
 0x137   : > { %v674_v36 = vcvt.s32.f32 %v672_v14  ;;  %v568_v14 = vcvt.s32.f32 %v566_v42 }
 0x139   : > { %675 = vmin.xlane.f32.xlu1 %v674_v36 }
 0x15f   : > { %v3293_v53 = vpop.xlane.xlu1 %541 }
 0x160   : > { %vm554_vm13 = vcmp.le.f32.partialorder %v3196_v40, %v3293_v53  ;;  %v626_v40 = vand.u32 65535, %v625_v28 }
 0x161   : > { %v562_v29 = vsel %vm554_vm13, %v3125_v39, 64 }
 0x162   : > { %v640_v47 = vsel %vm524_vm8, %v562_v29, 2147483647  ;;  %v628_v29 = vcvt.s32.f32 %v626_v40 }
 0x163   : > { %v642_v32 = vshra.s32 %v640_v47, 16  ;;  %v641_v44 = vand.u32 65535, %v640_v47  ;;  %v3320_v47 = vperm.slane %v3025_v1, 1 }
 0x165   : > { %v644_v16 = vcvt.s32.f32 %v642_v32 }
 0x167   : > { %645 = vmin.xlane.f32.xlu0 %v644_v16 }
 0x18e   : > { %v571_v25 = vpop.xlane.xlu2 %570  ;;  %v601_v19 = vpop.xlane.xlu0 %600 }
 0x18f   : > { %vm572_vm14 = vcmp.eq.f32.partialorder %v569_v26, %v571_v25  ;;  %vm602_vm15 = vcmp.eq.f32.partialorder %v599_v23, %v601_v19  ;;  %v581_v23 = vand.u32 65535, %v580_v34  ;;  %v607_v40 = vcvt.f32.s32 %v601_v19 }
 0x190   : > { %v573_v27 = vsel %vm572_vm14, %v568_v14, inf  ;;  %v603_v18 = vsel %vm602_vm15, %v598_v0, inf  ;;  %vm808_vm15 = vcmp.lt.f32.partialorder %v3247_v12, inf }
 0x191   : > { %574 = vmin.xlane.f32.xlu1 %v573_v27  ;;  %604 = vmin.xlane.f32.xlu2 %v603_v18  ;;  %v583_v18 = vcvt.s32.f32 %v581_v23  ;;  %v671_v27 = vand.u32 65535, %v670_v13  ;;  %v3317_v23 = vperm.slane %v3025_v1, 0 }
 0x193   : > { %v673_v42 = vcvt.s32.f32 %v671_v27 }
 0x196   : > { %v631_v15 = vpop.xlane.xlu2 %630 }
 0x197   : > { %vm632_vm0 = vcmp.eq.f32.partialorder %v629_v31, %v631_v15  ;;  %v611_v31 = vand.u32 65535, %v610_v45  ;;  %v577_v45 = vcvt.f32.s32 %v571_v25  ;;  %v2912_v25 = vmov 0.0  }
 0x198   : > { %v633_v32 = vsel %vm632_vm0, %v628_v29, inf  ;;  %vm1491_vm0 = vcmask 261120  }
 0x199   : > { %634 = vmin.xlane.f32.xlu1 %v633_v32 }
 0x19c   : > { %v3301_v22 = vpop.xlane.xlu1 %585 }
 0x19d   : > { %vm587_vm2 = vcmp.eq.f32.partialorder %v584_v38, %v3301_v22  ;;  %v643_v38 = vcvt.s32.f32 %v641_v44 }
 0x19e   : > { %v3303_v17 = vpop.xlane.xlu2 %660  ;;  %v588_v28 = vsel %vm587_vm2, %v583_v18, inf  ;;  %v3323_v18 = vperm.slane %v3025_v1, 2  ;;  %vm814_vm2 = vcmp.lt.f32.partialorder %v3270_v33, inf }
 0x19f   : > { %vm662_vm1 = vcmp.eq.f32.partialorder %v659_v43, %v3303_v17  ;;  %v613_v43 = vcvt.s32.f32 %v611_v31 }
 0x1a0   : > { %v663_v26 = vsel %vm662_vm1, %v658_v20, inf  ;;  %v608_v20 = vshll.u32 %v607_v40, 16  ;;  %v667_v40 = vcvt.f32.s32 %v3303_v17  ;;  %vm812_vm1 = vcmp.lt.f32.partialorder %v3259_v52, inf }
 0x1a1   : > { %664 = vmin.xlane.f32.xlu0 %v663_v26 }
 0x1a4   : > { %v3306_v0 = vpop.xlane.xlu1 %615 }
 0x1a5   : > { %vm617_vm5 = vcmp.eq.f32.partialorder %v614_v46, %v3306_v0 }
 0x1a6   : > { %v618_v34 = vsel %vm617_vm5, %v613_v43, inf  ;;  %vm811_vm5 = vcmp.lt.f32.partialorder %v3277_v24, inf }
 0x1a9   : > { %589 = vmin.xlane.f32.xlu0 %v588_v28  ;;  %v637_v28 = vcvt.f32.s32 %v631_v15 }
 0x1ab   : > { %v638_v43 = vshll.u32 %v637_v28, 16 }
 0x1ac   : > { %v3309_v41 = vpop.xlane.xlu1 %675 }
 0x1ad   : > { %vm677_vm3 = vcmp.eq.f32.partialorder %v674_v36, %v3309_v41  ;;  %v578_v36 = vshll.u32 %v577_v45, 16 }
 0x1ae   : > { %v678_v10 = vsel %vm677_vm3, %v673_v42, inf  ;;  %vm809_vm3 = vcmp.lt.f32.partialorder %v3265_v30, inf }
 0x1af   : > { %679 = vmin.xlane.f32.xlu1 %v678_v10 }
 0x1b1   : > { %619 = vmin.xlane.f32.xlu0 %v618_v34 }
 0x1da   : > { %v3313_v14 = vpop.xlane.xlu0 %645 }
 0x1db   : > { %vm647_vm4 = vcmp.eq.f32.partialorder %v644_v16, %v3313_v14 }
 0x1dc   : > { %v648_v13 = vsel %vm647_vm4, %v643_v38, inf  ;;  %vm813_vm4 = vcmp.lt.f32.partialorder %v3293_v53, inf }
 0x1dd   : > { %649 = vmin.xlane.f32.xlu2 %v648_v13 }
 0x204   : > { %v575_v29 = vpop.xlane.xlu1 %574  ;;  %v605_v32 = vpop.xlane.xlu2 %604 }
 0x205   : > { %v576_v26 = vcvt.f32.s32 %v575_v29  ;;  %v606_v46 = vcvt.f32.s32 %v605_v32 }
 0x207   : > { %v579_v16 = vadd.s32 %v578_v36, %v576_v26  ;;  %v609_v27 = vadd.s32 %v608_v20, %v606_v46  ;;  %v668_v26 = vshll.u32 %v667_v40, 16  ;;  %v622_v40 = vcvt.f32.s32 %v3306_v0 }
 0x209   : > { %vm685_vm6 = vcmp.eq.s32.totalorder %v3125_v39, %v579_v16  ;;  %vm687_vm7 = vcmp.eq.s32.totalorder %v3125_v39, %v609_v27 }
 0x20a   : > { %v2633_v19 = vsel %vm685_vm6, 1.0, %v2912_v25  ;;  %v2635_v13 = vsel %vm687_vm7, 1.0, %v2912_v25  ;;  %vm815_vm6 = vcmp.lt.f32.partialorder %v3283_v48, inf  ;;  %vm2498_vm7 = vcmask 516096  }
 0x20b   : > { %v710_v31 = vmul.f32 %v2633_v19, %v3317_v23  ;;  %v776_v42 = vmul.f32 %v2633_v19, %v3323_v18  ;;  %v743_v10 = vmul.f32 %v2633_v19, %v3320_v47  ;;  %v778_v29 = vmul.f32 %v2635_v13, %v3323_v18 }
 0x20c   : > { %v635_v34 = vpop.xlane.xlu1 %634  ;;  %v745_v32 = vmul.f32 %v2635_v13, %v3320_v47  ;;  %v712_v36 = vmul.f32 %v2635_v13, %v3317_v23 }
 0x20d   : > { %v636_v1 = vcvt.f32.s32 %v635_v34  ;;  %v718_v44 = vsel %vm524_vm8, %v710_v31, 0.0  ;;  %v784_v15 = vsel %vm524_vm8, %v776_v42, 0.0  ;;  %v751_v38 = vsel %vm524_vm8, %v743_v10, 0.0 }
 0x20e   : > { %719 = vadd.xlane.f32.xlu1 %v718_v44  ;;  %785 = vadd.xlane.f32.xlu0 %v784_v15  ;;  %v790_v16 = vsel %vm524_vm8, %v778_v29, 0.0  ;;  %v757_v27 = vsel %vm524_vm8, %v745_v32, 0.0  ;;  %v724_v28 = vsel %vm524_vm8, %v712_v36, 0.0  ;;  %v592_v31 = vcvt.f32.s32 %v3301_v22 }
 0x20f   : > { %v639_v45 = vadd.s32 %v638_v43, %v636_v1  ;;  %752 = vadd.xlane.f32.xlu2 %v751_v38 }
 0x210   : > { %v593_v1 = vshll.u32 %v592_v31, 16 }
 0x211   : > { %vm689_vm9 = vcmp.eq.s32.totalorder %v3125_v39, %v639_v45 }
 0x212   : > { %v2637_v17 = vsel %vm689_vm9, 1.0, %v2912_v25 }
 0x213   : > { %v780_v42 = vmul.f32 %v2637_v17, %v3323_v18  ;;  %v747_v10 = vmul.f32 %v2637_v17, %v3320_v47  ;;  %v714_v43 = vmul.f32 %v2637_v17, %v3317_v23 }
 0x214   : > { %v665_v20 = vpop.xlane.xlu0 %664 }
 0x215   : > { %v666_v46 = vcvt.f32.s32 %v665_v20  ;;  %v796_v15 = vsel %vm524_vm8, %v780_v42, 0.0  ;;  %v763_v38 = vsel %vm524_vm8, %v747_v10, 0.0  ;;  %v730_v13 = vsel %vm524_vm8, %v714_v43, 0.0 }
 0x216   : > { %791 = vadd.xlane.f32.xlu1 %v790_v16  ;;  %758 = vadd.xlane.f32.xlu0 %v757_v27 }
 0x217   : > { %v669_v19 = vadd.s32 %v668_v26, %v666_v46  ;;  %725 = vadd.xlane.f32.xlu2 %v724_v28  ;;  %v623_v26 = vshll.u32 %v622_v40, 16 }
 0x219   : > { %vm691_vm10 = vcmp.eq.s32.totalorder %v3125_v39, %v669_v19 }
 0x21a   : > { %v2639_v22 = vsel %vm691_vm10, 1.0, %v2912_v25 }
 0x21b   : > { %v782_v29 = vmul.f32 %v2639_v22, %v3323_v18  ;;  %v716_v32 = vmul.f32 %v2639_v22, %v3317_v23  ;;  %v749_v36 = vmul.f32 %v2639_v22, %v3320_v47 }
 0x21c   : > { %v590_v34 = vpop.xlane.xlu0 %589 }
 0x21d   : > { %v591_v44 = vcvt.f32.s32 %v590_v34  ;;  %v802_v16 = vsel %vm524_vm8, %v782_v29, 0.0  ;;  %v736_v27 = vsel %vm524_vm8, %v716_v32, 0.0  ;;  %v769_v28 = vsel %vm524_vm8, %v749_v36, 0.0 }
 0x21e   : > { %797 = vadd.xlane.f32.xlu1 %v796_v15  ;;  %764 = vadd.xlane.f32.xlu0 %v763_v38  ;;  %v682_v29 = vcvt.f32.s32 %v3309_v41  ;;  %v652_v32 = vcvt.f32.s32 %v3313_v14 }
 0x21f   : > { %v594_v45 = vadd.s32 %v593_v1, %v591_v44  ;;  %731 = vadd.xlane.f32.xlu2 %v730_v13 }
 0x221   : > { %vm686_vm11 = vcmp.eq.s32.totalorder %v3125_v39, %v594_v45 }
 0x222   : > { %v2634_v0 = vsel %vm686_vm11, 1.0, %v2912_v25  ;;  %v680_v40 = vpop.xlane.xlu1 %679 }
 0x223   : > { %v777_v19 = vmul.f32 %v2634_v0, %v3323_v18  ;;  %v744_v31 = vmul.f32 %v2634_v0, %v3320_v47  ;;  %v711_v42 = vmul.f32 %v2634_v0, %v3317_v23  ;;  %v681_v36 = vcvt.f32.s32 %v680_v40 }
 0x224   : > { %v620_v20 = vpop.xlane.xlu0 %619 }
 0x225   : > { %v621_v46 = vcvt.f32.s32 %v620_v20  ;;  %v787_v10 = vsel %vm524_vm8, %v777_v19, 0.0  ;;  %v754_v43 = vsel %vm524_vm8, %v744_v31, 0.0  ;;  %v721_v34 = vsel %vm524_vm8, %v711_v42, 0.0 }
 0x226   : > { %803 = vadd.xlane.f32.xlu0 %v802_v16  ;;  %737 = vadd.xlane.f32.xlu1 %v736_v27 }
 0x227   : > { %v624_v17 = vadd.s32 %v623_v26, %v621_v46  ;;  %770 = vadd.xlane.f32.xlu2 %v769_v28  ;;  %v683_v26 = vshll.u32 %v682_v29, 16  ;;  %v653_v46 = vshll.u32 %v652_v32, 16 }
 0x229   : > { %vm688_vm12 = vcmp.eq.s32.totalorder %v3125_v39, %v624_v17  ;;  %v684_v27 = vadd.s32 %v683_v26, %v681_v36  ;;  %v1490_v36 = vld [vmem:[%s4407_s3 + $0x18] sm:$0xff]  ;;  %v4429_v26 = vmov 2  }
 0x22a   : > { %v2636_v1 = vsel %vm688_vm12, 1.0, %v2912_v25  ;;  %1528 = vmatpush.msrb.mxu1 %v1490_v36  ;;  %v2823_v36 = vld [vmem:[%s3023_s19 + $0x8] sm:$0xff] }
 0x22b   : > { %v779_v44 = vmul.f32 %v2636_v1, %v3323_v18  ;;  %v746_v15 = vmul.f32 %v2636_v1, %v3320_v47  ;;  %v713_v38 = vmul.f32 %v2636_v1, %v3317_v23  ;;  %vm692_vm14 = vcmp.eq.s32.totalorder %v3125_v39, %v684_v27  ;;  %v1479_v27 = vld [vmem:[%s3423_s16] sm:$0xff] }
 0x22d   : > { %v793_v13 = vsel %vm524_vm8, %v779_v44, 0.0  ;;  %v760_v22 = vsel %vm524_vm8, %v746_v15, 0.0  ;;  %v727_v45 = vsel %vm524_vm8, %v713_v38, 0.0 }
 0x22e   : > { %788 = vadd.xlane.f32.xlu1 %v787_v10  ;;  %755 = vadd.xlane.f32.xlu0 %v754_v43  ;;  %v2640_v10 = vsel %vm692_vm14, 1.0, %v2912_v25 }
 0x22f   : > { %722 = vadd.xlane.f32.xlu2 %v721_v34  ;;  %v783_v43 = vmul.f32 %v2640_v10, %v3323_v18  ;;  %v717_v34 = vmul.f32 %v2640_v10, %v3317_v23  ;;  %v750_v1 = vmul.f32 %v2640_v10, %v3320_v47 }
 0x231   : > { %v805_v44 = vsel %vm524_vm8, %v783_v43, 0.0  ;;  %v772_v15 = vsel %vm524_vm8, %v750_v1, 0.0  ;;  %v1481_v43 = vld [vmem:[%s3423_s16 + $0x10] sm:$0xff] }
 0x236   : > { %794 = vadd.xlane.f32.xlu1 %v793_v13  ;;  %761 = vadd.xlane.f32.xlu0 %v760_v22 }
 0x237   : > { %728 = vadd.xlane.f32.xlu2 %v727_v45 }
 0x250   : > { %v650_v20 = vpop.xlane.xlu2 %649 }
 0x251   : > { %v651_v16 = vcvt.f32.s32 %v650_v20  ;;  %v1489_v20 = vld [vmem:[%s4407_s3 + $0x10] sm:$0xff] }
 0x252   : > { %1529 = vmatpush.msrb.mxu1 %v1489_v20 }
 0x253   : > { %v654_v28 = vadd.s32 %v653_v46, %v651_v16  ;;  %v1487_v16 = vld [vmem:[%s4407_s3] sm:$0xff] }
 0x255   : > { %vm690_vm13 = vcmp.eq.s32.totalorder %v3125_v39, %v654_v28  ;;  %v739_v39 = vsel %vm524_vm8, %v717_v34, 0.0 }
 0x256   : > { %v2638_v0 = vsel %vm690_vm13, 1.0, %v2912_v25 }
 0x257   : > { %v715_v17 = vmul.f32 %v2638_v0, %v3317_v23  ;;  %v781_v19 = vmul.f32 %v2638_v0, %v3323_v18  ;;  %v748_v31 = vmul.f32 %v2638_v0, %v3320_v47 }
 0x259   : > { %v733_v41 = vsel %vm524_vm8, %v715_v17, 0.0  ;;  %v799_v14 = vsel %vm524_vm8, %v781_v19, 0.0  ;;  %v766_v42 = vsel %vm524_vm8, %v748_v31, 0.0  ;;  %vm810_vm8 = vcmp.lt.f32.partialorder %v3245_v11, inf }
 0x25a   : > { %734 = vadd.xlane.f32.xlu1 %v733_v41  ;;  %800 = vadd.xlane.f32.xlu0 %v799_v14  ;;  %v4430_v17 = vmov 1   ;;  %v4431_v31 = vmov 0   ;;  %v1480_v41 = vld [vmem:[%s3423_s16 + $0x8] sm:$0xff] }
 0x25b   : > { %767 = vadd.xlane.f32.xlu2 %v766_v42 }
 0x262   : > { %806 = vadd.xlane.f32.xlu1 %v805_v44  ;;  %740 = vadd.xlane.f32.xlu0 %v739_v39  ;;  %v2821_v39 = vld [vmem:[%s3023_s19 + $0x30] sm:$0xff] }
 0x263   : > { %773 = vadd.xlane.f32.xlu2 %v772_v15 }
 0x281   : > { %v720_v38 = vpop.xlane.xlu1 %719  ;;  %v786_v25 = vpop.xlane.xlu0 %785 }
 0x282   : > { %v816_v13 = vsel %vm808_vm15, %v720_v38, 0.0  ;;  %v832_v22 = vsel %vm808_vm15, %v786_v25, 0.0  ;;  %v753_v47 = vpop.xlane.xlu2 %752  ;;  %v2822_v25 = vld [vmem:[%s3023_s19 + $0x20] sm:$0xff] }
 0x283   : > { %v990_v18 = vmul.f32 %v816_v13, %v3028_v2  ;;  %v3397_v23 = vmul.f32 %v832_v22, %v3028_v2  ;;  %v824_v45 = vsel %vm808_vm15, %v753_v47, 0.0 }
 0x284   : > { %v1055_v29 = vmul.f32 %v824_v45, %v3028_v2  ;;  %v1488_v2 = vld [vmem:[%s4407_s3 + $0x8] sm:$0xff] }
 0x285   : > { %1000 = vperm.xlu1 %2767, %v990_v18   ;;  %1186 = vperm.xlu0 %2764, %v990_v18  }
 0x286   : > { %1130 = vperm.xlu2 %2769, %v3397_v23   ;;  %1530 = vmatpush.msrb.mxu1 %v1488_v2 }
 0x288   : > { %1531 = vmatpush.msrb.mxu1 %v1487_v16 }
 0x289   : > { %v792_v40 = vpop.xlane.xlu1 %791  ;;  %v759_v46 = vpop.xlane.xlu0 %758  ;;  %2641 = vmatmul.msk.f32.vlgmr.msrb.gmra.mxu1 %vm1491_vm0, %v1479_v27 }
 0x28a   : > { %v834_v12 = vsel %vm810_vm8, %v792_v40, 0.0  ;;  %v826_v28 = vsel %vm810_vm8, %v759_v46, 0.0  ;;  %v726_v19 = vpop.xlane.xlu2 %725  ;;  %v1483_v46 = vld [vmem:[%s3423_s16 + $0x20] sm:$0xff] }
 0x28b   : > { %v3405_v32 = vmul.f32 %v834_v12, %v3031_v3  ;;  %v1057_v0 = vmul.f32 %v826_v28, %v3031_v3  ;;  %v818_v14 = vsel %vm810_vm8, %v726_v19, 0.0  ;;  %v1482_v12 = vld [vmem:[%s3423_s16 + $0x18] sm:$0xff] }
 0x28c   : > { %v992_v42 = vmul.f32 %v818_v14, %v3031_v3  ;;  %v2824_v19 = vld [vmem:[%s3023_s19 + $0x18] sm:$0xff] }
 0x28d   : > { %1065 = vperm.xlu1 %2767, %v1055_v29   ;;  %2772 = vset.pattern.permute.xlu0 %v4429_v26 }
 0x28e   : > { %1140 = vperm.xlu2 %2769, %v3405_v32   ;;  %1382 = vperm.xlu0 %2772, %v1055_v29  }
 0x291   : > { %2642 = vmatmul.msk.f32.gmra.mxu1 %vm1491_vm0, %v1480_v41  ;;  %v798_v11 = vpop.xlane.xlu1 %797  ;;  %v765_v13 = vpop.xlane.xlu0 %764 }
 0x292   : > { %v732_v10 = vpop.xlane.xlu2 %731  ;;  %v836_v34 = vsel %vm812_vm1, %v798_v11, 0.0  ;;  %v828_v40 = vsel %vm812_vm1, %v765_v13, 0.0 }
 0x293   : > { %v3456_v44 = vmul.f32 %v836_v34, %v3038_v4  ;;  %v820_v38 = vsel %vm812_vm1, %v732_v10, 0.0 }
 0x294   : > { %v994_v4 = vmul.f32 %v2822_v25, %v820_v38 }
 0x295   : > { %2770 = vset.pattern.permute.xlu1 %v4430_v17 }
 0x296   : > { %2777 = vset.pattern.permute.xlu2 %v4430_v17  ;;  %1235 = vperm.xlu1 %2770, %v1055_v29   ;;  %v1059_v29 = vmul.f32 %v2822_v25, %v828_v40  ;;  %v3544_v25 = vld [vmem:[%s3023_s19 + $0x28] sm:$0xff]  ;;  %v3563_v40 = vld [vmem:[%s3023_s19 + $0x38] sm:$0xff] }
 0x297   : > { %2775 = vset.pattern.permute.xlu0 %v4431_v31  ;;  %1243 = vperm.xlu2 %2777, %v1057_v0  }
 0x298   : > { %1075 = vperm.xlu0 %2775, %v1057_v0  }
 0x299   : > { %2643 = vmatmul.msk.f32.gmra.mxu1 %vm1491_vm0, %v1481_v43  ;;  %v738_v22 = vpop.xlane.xlu1 %737 }
 0x29a   : > { %v771_v3 = vpop.xlane.xlu2 %770 }
 0x29b   : > { %v830_v1 = vsel %vm814_vm2, %v771_v3, 0.0 }
 0x29c   : > { %v3461_v15 = vmul.f32 %v2821_v39, %v830_v1 }
 0x29e   : > { %1284 = vperm.xlu1 %2770, %v3397_v23  }
 0x29f   : > { %2780 = vset.pattern.permute.xlu2 %v4429_v26 }
 0x2a0   : > { %1390 = vperm.xlu2 %2780, %v1057_v0   ;;  %2776 = vset.pattern.permute.xlu0 %v4430_v17 }
 0x2a1   : > { %1194 = vperm.xlu0 %2776, %v992_v42   ;;  %2644 = vmatmul.msk.f32.gmra.mxu1 %vm1491_vm0, %v1482_v12  ;;  %v789_v0 = vpop.xlane.xlu1 %788 }
 0x2a2   : > { %v723_v45 = vpop.xlane.xlu2 %722  ;;  %v833_v3 = vsel %vm809_vm3, %v789_v0, 0.0 }
 0x2a3   : > { %v3526_v34 = vmul.f32 %v2823_v36, %v833_v3 }
 0x2a6   : > { %2771 = vset.pattern.permute.xlu1 %v4429_v26 }
 0x2a7   : > { %1333 = vperm.xlu1 %2771, %v990_v18   ;;  %v822_v18 = vsel %vm814_vm2, %v738_v22, 0.0 }
 0x2a8   : > { %1439 = vperm.xlu2 %2780, %v3405_v32   ;;  %v3479_v47 = vmul.f32 %v2821_v39, %v822_v18 }
 0x2a9   : > { %2779 = vset.pattern.permute.xlu0 %v4429_v26  ;;  %2645 = vmatmul.msk.f32.gmra.mxu1 %vm1491_vm0, %v1483_v46  ;;  %v795_v43 = vpop.xlane.xlu1 %794 }
 0x2aa   : > { %1341 = vperm.xlu0 %2779, %v992_v42   ;;  %v729_v2 = vpop.xlane.xlu2 %728  ;;  %v835_v1 = vsel %vm811_vm5, %v795_v43, 0.0 }
 0x2ab   : > { %v819_v27 = vsel %vm811_vm5, %v729_v2, 0.0  ;;  %v3532_v38 = vmul.f32 %v2824_v19, %v835_v1 }
 0x2ac   : > { %v3507_v41 = vmul.f32 %v2824_v19, %v819_v27 }
 0x2af   : > { %2773 = vset.pattern.permute.xlu1 %v4431_v31 }
 0x2b0   : > { %2782 = vset.pattern.permute.xlu2 %v4431_v31  ;;  %1010 = vperm.xlu1 %2773, %v992_v42  }
 0x2b1   : > { %1150 = vperm.xlu2 %2782, %v3456_v44  }
 0x2b2   : > { %2788 = vset.pattern.permute.xlu0 %v4431_v31 }
 0x2b3   : > { %1095 = vperm.xlu0 %2788, %v3461_v15  }
 0x2b8   : > { %2774 = vset.pattern.permute.xlu1 %v4429_v26 }
 0x2b9   : > { %2783 = vset.pattern.permute.xlu2 %v4430_v17  ;;  %1431 = vperm.xlu1 %2774, %v3397_v23   ;;  %v804_v23 = vpop.xlane.xlu0 %803 }
 0x2ba   : > { %1202 = vperm.xlu2 %2783, %v994_v4   ;;  %v838_v16 = vsel %vm814_vm2, %v804_v23, 0.0 }
 0x2bb   : > { %2791 = vset.pattern.permute.xlu0 %v4430_v17  ;;  %v3503_v28 = vmul.f32 %v2821_v39, %v838_v16 }
 0x2bc   : > { %1259 = vperm.xlu0 %2791, %v3461_v15  }
 0x2c1   : > { %2778 = vset.pattern.permute.xlu1 %v4430_v17  ;;  %v756_v52 = vpop.xlane.xlu0 %755 }
 0x2c2   : > { %2785 = vset.pattern.permute.xlu2 %v4429_v26  ;;  %1292 = vperm.xlu1 %2778, %v3405_v32   ;;  %v817_v32 = vsel %vm809_vm3, %v723_v45, 0.0  ;;  %v825_v14 = vsel %vm809_vm3, %v756_v52, 0.0 }
 0x2c3   : > { %1349 = vperm.xlu2 %2785, %v994_v4   ;;  %v3492_v20 = vmul.f32 %v2823_v36, %v817_v32  ;;  %v3515_v10 = vmul.f32 %v2823_v36, %v825_v14  ;;  %v840_v36 = vld [vmem:[%s4409_s5] sm:$0xff] }
 0x2c4   : > { %2793 = vset.pattern.permute.xlu0 %v4429_v26  ;;  %v3580_v2 = vperm.slane %v840_v36, 1  ;;  %v3582_v46 = vperm.slane %v840_v36, 0  ;;  %v3588_v27 = vperm.slane %v840_v36, 3 }
 0x2c5   : > { %1357 = vperm.xlu0 %2793, %v3479_v47  }
 0x2c6   : > { %v925_v16 = vmul.f32 %v3580_v2, %v3233_v62  ;;  %v3598_v62 = vperm.slane %v840_v36, 4 }
 0x2c9   : > { %v762_v33 = vpop.xlane.xlu0 %761 }
 0x2ca   : > { %2781 = vset.pattern.permute.xlu1 %v4431_v31  ;;  %v827_v42 = vsel %vm811_vm5, %v762_v33, 0.0  ;;  %v3596_v33 = vperm.slane %v840_v36, 2 }
 0x2cb   : > { %1398 = vperm.xlu2 %2785, %v1059_v29   ;;  %1020 = vperm.xlu1 %2781, %v994_v4   ;;  %v3519_v11 = vmul.f32 %v2824_v19, %v827_v42  ;;  %v1585_v19 = vld [vmem:[%s4408_s4 + $0x18] sm:$0xff] }
 0x2cc   : > { %1622 = vmatpush.msrb.mxu2 %v1585_v19  ;;  %v974_v42 = vmul.f32 %v3596_v33, %v3209_v50  ;;  %v1582_v50 = vld [vmem:[%s4408_s4] sm:$0xff] }
 0x2cd   : > { %2795 = vset.pattern.permute.xlu0 %v4431_v31  ;;  %v735_v39 = vpop.xlane.xlu1 %734 }
 0x2ce   : > { %1005 = vperm.xlu0 %2795, %v3492_v20   ;;  %v821_v30 = vsel %vm813_vm4, %v735_v39, 0.0  ;;  %v768_v24 = vpop.xlane.xlu2 %767 }
 0x2cf   : > { %v995_v4 = vmul.f32 %v3544_v25, %v821_v30  ;;  %v829_v1 = vsel %vm813_vm4, %v768_v24, 0.0 }
 0x2d1   : > { %v801_v52 = vpop.xlane.xlu0 %800 }
 0x2d3   : > { %2792 = vset.pattern.permute.xlu2 %v4430_v17  ;;  %1085 = vperm.xlu1 %2781, %v1059_v29  }
 0x2d4   : > { %1308 = vperm.xlu2 %2792, %v3503_v28  }
 0x2d5   : > { %v807_v13 = vpop.xlane.xlu1 %806 }
 0x2d6   : > { %1015 = vperm.xlu0 %2795, %v3507_v41   ;;  %v3552_v18 = vpop.xlane.xlu2 %773  ;;  %v839_v23 = vsel %vm815_vm6, %v807_v13, 0.0  ;;  %v1060_v13 = vmul.f32 %v3544_v25, %v829_v1 }
 0x2d7   : > { %v3566_v12 = vmul.f32 %v3563_v40, %v839_v23 }
 0x2d9   : > { %v3613_v39 = vpop.xlane.xlu0 %740 }
 0x2db   : > { %2784 = vset.pattern.permute.xlu1 %v4430_v17 }
 0x2dc   : > { %2796 = vset.pattern.permute.xlu2 %v4431_v31  ;;  %1251 = vperm.xlu1 %2784, %v1059_v29  }
 0x2dd   : > { %1070 = vperm.xlu2 %2796, %v3515_v10  }
 0x2de   : > { %2804 = vset.pattern.permute.xlu0 %v4430_v17 }
 0x2df   : > { %1247 = vperm.xlu0 %2804, %v3519_v11  }
 0x2e4   : > { %1300 = vperm.xlu1 %2784, %v3456_v44  }
 0x2e5   : > { %1135 = vperm.xlu2 %2796, %v3526_v34  }
 0x2e7   : > { %2807 = vset.pattern.permute.xlu0 %v4429_v26 }
 0x2e8   : > { %1443 = vperm.xlu0 %2807, %v3532_v38  }
 0x2ec   : > { %2786 = vset.pattern.permute.xlu1 %v4431_v31 }
 0x2ed   : > { %2798 = vset.pattern.permute.xlu2 %v4430_v17  ;;  %1030 = vperm.xlu1 %2786, %v3479_v47  }
 0x2ee   : > { %1288 = vperm.xlu2 %2798, %v3526_v34  }
 0x2f0   : > { %2810 = vset.pattern.permute.xlu0 %v4430_v17 }
 0x2f1   : > { %1206 = vperm.xlu0 %2810, %v995_v4  }
 0x2f5   : > { %2787 = vset.pattern.permute.xlu1 %v4429_v26 }
 0x2f6   : > { %2800 = vset.pattern.permute.xlu2 %v4429_v26  ;;  %1447 = vperm.xlu1 %2787, %v3456_v44   ;;  %v1131_v44 = vpop.permute.xlu2 %1130 }
 0x2f7   : > { %1386 = vperm.xlu2 %2800, %v3515_v10   ;;  %v1001_v22 = vpop.permute.xlu1 %1000  ;;  %v1187_v19 = vpop.permute.xlu0 %1186 }
 0x2f8   : > { %v1039_v3 = vmul.f32 %v3588_v27, %v1001_v22  ;;  %v3620_v22 = vperm.slane %v840_v36, 5 }
 0x2f9   : > { %2812 = vset.pattern.permute.xlu0 %v4429_v26 }
 0x2fa   : > { %1353 = vperm.xlu0 %2812, %v995_v4  }
 0x2fe   : > { %2789 = vset.pattern.permute.xlu1 %v4431_v31  ;;  %v3574_v32 = vpop.permute.xlu2 %1140 }
 0x2ff   : > { %2801 = vset.pattern.permute.xlu2 %v4431_v31  ;;  %v1066_v45 = vpop.permute.xlu1 %1065  ;;  %1160 = vperm.xlu1 %2789, %v3503_v28  }
 0x300   : > { %1080 = vperm.xlu2 %2801, %v3519_v11  }
 0x302   : > { %2816 = vset.pattern.permute.xlu0 %v4430_v17 }
 0x303   : > { %1312 = vperm.xlu0 %2816, %v3566_v12  }
 0x306   : > { %v3605_v43 = vpop.permute.xlu2 %1243 }
 0x307   : > { %2790 = vset.pattern.permute.xlu1 %v4430_v17 }
 0x308   : > { %2805 = vset.pattern.permute.xlu2 %v4430_v17  ;;  %v1236_v29 = vpop.permute.xlu1 %1235  ;;  %1210 = vperm.xlu1 %2790, %v3479_v47   ;;  %v876_v47 = vmul.f32 %v3582_v46, %v3203_v35  ;;  %v1584_v35 = vld [vmem:[%s4408_s4 + $0x10] sm:$0xff] }
 0x309   : > { %1296 = vperm.xlu2 %2805, %v3532_v38   ;;  %1623 = vmatpush.msrb.mxu2 %v1584_v35  ;;  %v3632_v35 = vperm.slane %v840_v36, 7 }
 0x30a   : > { %v933_v14 = vadd.f32 %v925_v16, %v876_v47  ;;  %v3625_v47 = vperm.slane %v840_v36, 6 }
 0x30b   : > { %2820 = vset.pattern.permute.xlu0 %v4431_v31 }
 0x30c   : > { %v982_v30 = vadd.f32 %v974_v42, %v933_v14  ;;  %v3630_v14 = vld [vmem:[%s4409_s5 + $0x8] sm:$0xff]  ;;  %v1218_v1 = vmul.f32 %v3625_v47, %v1187_v19  ;;  %v1383_v19 = vpop.permute.xlu0 %1382 }
 0x30d   : > { %v3653_v21 = vperm.slane %v3630_v14, 2 }
 0x30e   : > { %v1047_v23 = vadd.f32 %v1039_v3, %v982_v30  ;;  %v3634_v42 = vpop.permute.xlu2 %1390  ;;  %v3642_v30 = vperm.slane %v3630_v14, 1 }
 0x30f   : > { %v1414_v59 = vmul.f32 %v3653_v21, %v1383_v19 }
 0x310   : > { %v1285_v0 = vpop.permute.xlu1 %1284  ;;  %2794 = vset.pattern.permute.xlu1 %v4429_v26 }
 0x311   : > { %2808 = vset.pattern.permute.xlu2 %v4431_v31  ;;  %1406 = vperm.xlu1 %2794, %v3461_v15   ;;  %v1583_v15 = vld [vmem:[%s4408_s4 + $0x8] sm:$0xff] }
 0x312   : > { %1025 = vperm.xlu2 %2808, %v995_v4   ;;  %v1104_v4 = vmul.f32 %v3598_v62, %v1066_v45  ;;  %1624 = vmatpush.msrb.mxu2 %v1583_v15  ;;  %v1169_v45 = vmul.f32 %v3620_v22, %v1131_v44  ;;  %v3637_v15 = vperm.slane %v3630_v14, 0  ;;  %v1267_v44 = vmul.f32 %v3632_v35, %v1236_v29 }
 0x314   : > { %1625 = vmatpush.msrb.mxu2 %v1582_v50  ;;  %v1112_v24 = vadd.f32 %v1104_v4, %v1047_v23  ;;  %v1316_v50 = vmul.f32 %v3637_v15, %v1285_v0 }
 0x316   : > { %v1177_v3 = vadd.f32 %v1169_v45, %v1112_v24  ;;  %v837_v45 = vsel %vm813_vm4, %v801_v52, 0.0  ;;  %v3667_v52 = vld [vmem:[%s4409_s5 + $0x10] sm:$0xff] }
 0x318   : > { %v1226_v4 = vadd.f32 %v1218_v1, %v1177_v3  ;;  %v3655_v3 = vpop.permute.xlu2 %1439  ;;  %v1125_v1 = vmul.f32 %v3544_v25, %v837_v45  ;;  %v3670_v25 = vpop.f32.mrf.mxu1 }
 0x319   : > { %v1334_v16 = vpop.permute.xlu1 %1333  ;;  %2797 = vset.pattern.permute.xlu1 %v4430_v17  ;;  %4432 = vst [vmem:[#allocation12_spill] sm:$0xff] %v3670_v25 }
 0x31a   : > { %1090 = vperm.xlu2 %2808, %v1060_v13   ;;  %1190 = vperm.xlu1 %2797, %v3492_v20   ;;  %v1275_v23 = vadd.f32 %v1267_v44, %v1226_v4  ;;  %v1365_v24 = vmul.f32 %v3642_v30, %v1334_v16 }
 0x31c   : > { %v1324_v29 = vadd.f32 %v1316_v50, %v1275_v23  ;;  %v3673_v50 = vperm.slane %v3667_v52, 1 }
 0x31e   : > { %v1373_v0 = vadd.f32 %v1365_v24, %v1324_v29 }
 0x320   : > { %v1422_v16 = vadd.f32 %v1414_v59, %v1373_v0  ;;  %v3676_v24 = vpop.permute.xlu2 %1150  ;;  %v1484_v0 = vld [vmem:[%s3423_s16 + $0x28] sm:$0xff] }
 0x321   : > { %2646 = vmatmul.msk.f32.gmra.mxu1 %vm1491_vm0, %v1484_v0 }
 0x322   : > { %2811 = vset.pattern.permute.xlu2 %v4430_v17  ;;  %v3646_v36 = vpop.permute.xlu1 %1010  ;;  %1239 = vperm.xlu1 %2797, %v3515_v10   ;;  %v3660_v10 = vperm.slane %v3630_v14, 3 }
 0x323   : > { %1255 = vperm.xlu2 %2811, %v1060_v13  }
 0x328   : > { %v3690_v29 = vpop.permute.xlu2 %1202 }
 0x32a   : > { %2799 = vset.pattern.permute.xlu1 %v4429_v26 }
 0x32b   : > { %1304 = vperm.xlu2 %2811, %v1125_v1   ;;  %v1432_v53 = vpop.permute.xlu1 %1431  ;;  %1337 = vperm.xlu1 %2799, %v3492_v20  }
 0x32c   : > { %v1463_v44 = vmul.f32 %v3660_v10, %v1432_v53 }
 0x32e   : > { %v1471_v4 = vadd.f32 %v1463_v44, %v1422_v16  ;;  %v1076_v44 = vpop.permute.xlu0 %1075 }
 0x330   : > { %v1557_v23 = vadd.f32 %v3670_v25, %v1471_v4 }
 0x332   : > { %v3679_v20 = vadd.f32 %v3673_v50, %v1557_v23 }
 0x333   : > { %2813 = vset.pattern.permute.xlu2 %v4429_v26  ;;  %1435 = vperm.xlu1 %2799, %v3526_v34   ;;  %v823_v34 = vsel %vm815_vm6, %v3613_v39, 0.0  ;;  %v831_v39 = vsel %vm815_vm6, %v3552_v18, 0.0  ;;  %v1485_v18 = vld [vmem:[%s3423_s16 + $0x30] sm:$0xff] }
 0x334   : > { %v4417_v59 = vmax.f32 %v3679_v20, 0.0  ;;  %1402 = vperm.xlu2 %2813, %v1060_v13   ;;  %v3684_v45 = vpop.permute.xlu1 %1292  ;;  %v997_v13 = vmul.f32 %v3563_v40, %v823_v34  ;;  %v1062_v16 = vmul.f32 %v3563_v40, %v831_v39  ;;  %2647 = vmatmul.msk.f32.gmra.mxu1 %vm1491_vm0, %v1485_v18  ;;  %v1486_v34 = vld [vmem:[%s3423_s16 + $0x38] sm:$0xff]  ;;  %s2913_s16 = smov 32  }
 0x336   : > { %2649 = vmatmul.msk.f32.vlgmr.msrb.gmra.mxu2 %vm1491_vm0, %v4417_v59  ;;  %v1195_v48 = vpop.permute.xlu0 %1194 }
 0x33b   : > { %2802 = vset.pattern.permute.xlu1 %v4431_v31 }
 0x33c   : > { %1451 = vperm.xlu2 %2813, %v1125_v1   ;;  %1145 = vperm.xlu1 %2802, %v3532_v38   ;;  %v3705_v38 = vpop.permute.xlu2 %1349 }
 0x33d   : > { %v3693_v19 = vpop.permute.xlu1 %1020  ;;  %2648 = vmatmul.msk.f32.gmra.mxu1 %vm1491_vm0, %v1486_v34 }
 0x33e   : > { %v1342_v0 = vpop.permute.xlu0 %1341 }
 0x344   : > { %2815 = vset.pattern.permute.xlu2 %v4430_v17  ;;  %2803 = vset.pattern.permute.xlu1 %v4430_v17  ;;  %v3716_v4 = vpop.permute.xlu2 %1398 }
 0x345   : > { %1214 = vperm.xlu2 %2815, %v997_v13   ;;  %v3702_v53 = vpop.permute.xlu1 %1085  ;;  %1198 = vperm.xlu1 %2803, %v3507_v41   ;;  %4433 = vst [vmem:[#allocation13_spill] sm:$0xff] %v3716_v4 }
 0x346   : > { %v3735_v18 = vpop.permute.xlu0 %1095 }
 0x347   : > { %4437 = vst [vmem:[#allocation17_spill] sm:$0xff] %v3735_v18  ;;  %v927_v18 = vmul.f32 %v3580_v2, %v3235_v63  ;;  %v975_v63 = vmul.f32 %v3596_v33, %v3205_v5 }
 0x34c   : > { %v3724_v40 = vpop.permute.xlu2 %1308 }
 0x34d   : > { %1263 = vperm.xlu2 %2815, %v1062_v16   ;;  %2806 = vset.pattern.permute.xlu1 %v4429_v26  ;;  %4434 = vst [vmem:[#allocation14_spill] sm:$0xff] %v3724_v40 }
 0x34e   : > { %v3713_v17 = vpop.permute.xlu1 %1251  ;;  %1345 = vperm.xlu1 %2806, %v3507_v41   ;;  %v3739_v40 = vpop.permute.xlu0 %1259 }
 0x34f   : > { %4439 = vst [vmem:[#allocation19_spill] sm:$0xff] %v3739_v40  ;;  %v926_v40 = vmul.f32 %v3580_v2, %v3223_v57 }
 0x354   : > { %v1071_v39 = vpop.permute.xlu2 %1070 }
 0x355   : > { %2817 = vset.pattern.permute.xlu2 %v4429_v26  ;;  %v1105_v5 = vmul.f32 %v3598_v62, %v1071_v39  ;;  %v1318_v39 = vmul.f32 %v3637_v15, %v3684_v45  ;;  %v1416_v45 = vmul.f32 %v3653_v21, %v3634_v42 }
 0x356   : > { %1361 = vperm.xlu2 %2817, %v997_v13   ;;  %v3719_v23 = vpop.permute.xlu1 %1300  ;;  %1394 = vperm.xlu1 %2806, %v3519_v11   ;;  %v3744_v34 = vpop.permute.xlu0 %1357 }
 0x357   : > { %4441 = vst [vmem:[#allocation21_spill] sm:$0xff] %v3744_v34 }
 0x35c   : > { %v1136_v59 = vpop.permute.xlu2 %1135 }
 0x35e   : > { %1459 = vperm.xlu2 %2817, %v3566_v12   ;;  %2809 = vset.pattern.permute.xlu1 %v4431_v31 }
 0x35f   : > { %v3728_v41 = vpop.permute.xlu1 %1030  ;;  %1155 = vperm.xlu1 %2809, %v1125_v1  }
 0x360   : > { %4435 = vst [vmem:[#allocation15_spill] sm:$0xff] %v3728_v41 }
 0x364   : > { %v1289_v1 = vpop.permute.xlu2 %1288 }
 0x366   : > { %2819 = vset.pattern.permute.xlu2 %v4431_v31 }
 0x367   : > { %1035 = vperm.xlu1 %2809, %v997_v13   ;;  %v878_v13 = vmul.f32 %v3582_v46, %v3229_v60  ;;  %v1006_v60 = vpop.permute.xlu0 %1005 }
 0x368   : > { %v3733_v11 = vpop.permute.xlu1 %1447 }
 0x369   : > { %4436 = vst [vmem:[#allocation16_spill] sm:$0xff] %v3733_v11  ;;  %v935_v34 = vadd.f32 %v927_v18, %v878_v13  ;;  %v1106_v18 = vmul.f32 %v3598_v62, %v1076_v44 }
 0x36f   : > { %1100 = vperm.xlu1 %2809, %v1062_v16  }
 0x371   : > { %v3737_v25 = vpop.permute.xlu1 %1160 }
 0x372   : > { %4438 = vst [vmem:[#allocation18_spill] sm:$0xff] %v3737_v25  ;;  %v1387_v25 = vpop.permute.xlu2 %1386 }
 0x377   : > { %1165 = vperm.xlu1 %2809, %v3566_v12   ;;  %v877_v12 = vmul.f32 %v3582_v46, %v3215_v55  ;;  %v1040_v55 = vmul.f32 %v3588_v27, %v1006_v60 }
 0x37a   : > { %v3742_v41 = vpop.permute.xlu1 %1210  ;;  %v3765_v11 = vpop.permute.xlu2 %1080 }
 0x37b   : > { %4440 = vst [vmem:[#allocation20_spill] sm:$0xff] %v3742_v41  ;;  %v934_v41 = vadd.f32 %v926_v40, %v877_v12  ;;  %v1170_v12 = vmul.f32 %v3620_v22, %v1136_v59  ;;  %v1317_v59 = vmul.f32 %v3637_v15, %v1289_v1 }
 0x37d   : > { %v983_v13 = vadd.f32 %v975_v63, %v934_v41 }
 0x37f   : > { %2814 = vset.pattern.permute.xlu1 %v4429_v26  ;;  %v976_v26 = vmul.f32 %v3596_v33, %v3211_v51  ;;  %v1048_v4 = vadd.f32 %v1040_v55, %v983_v13 }
 0x380   : > { %1455 = vperm.xlu1 %2814, %v3503_v28   ;;  %v1041_v28 = vmul.f32 %v3588_v27, %v3646_v36  ;;  %v1171_v36 = vmul.f32 %v3620_v22, %v3574_v32  ;;  %v1269_v32 = vmul.f32 %v3632_v35, %v3605_v43 }
 0x381   : > { %v1113_v40 = vadd.f32 %v1105_v5, %v1048_v4  ;;  %v1415_v5 = vmul.f32 %v3653_v21, %v1387_v25  ;;  %v929_v25 = vmul.f32 %v3580_v2, %v3225_v58 }
 0x383   : > { %v3752_v6 = vpop.permute.xlu1 %1406  ;;  %v1178_v41 = vadd.f32 %v1170_v12, %v1113_v40 }
 0x384   : > { %4442 = vst [vmem:[#allocation22_spill] sm:$0xff] %v3752_v6  ;;  %v984_v6 = vadd.f32 %v976_v26, %v935_v34  ;;  %v1220_v34 = vmul.f32 %v3625_v47, %v1195_v48  ;;  %v3774_v26 = vpop.permute.xlu2 %1296 }
 0x386   : > { %v1049_v49 = vadd.f32 %v1041_v28, %v984_v6 }
 0x388   : > { %1410 = vperm.xlu1 %2814, %v1062_v16   ;;  %v1114_v51 = vadd.f32 %v1106_v18, %v1049_v49 }
 0x38a   : > { %v1179_v16 = vadd.f32 %v1171_v36, %v1114_v51  ;;  %v3787_v51 = vpop.f32.mrf.mxu1 }
 0x38c   : > { %v1191_v57 = vpop.permute.xlu1 %1190  ;;  %v1228_v49 = vadd.f32 %v1220_v34, %v1179_v16  ;;  %v3785_v18 = vpop.permute.xlu2 %1025 }
 0x38d   : > { %v1219_v44 = vmul.f32 %v3625_v47, %v1191_v57  ;;  %v1367_v57 = vmul.f32 %v3642_v30, %v1342_v0  ;;  %v1465_v0 = vmul.f32 %v3660_v10, %v3655_v3 }
 0x38e   : > { %v1277_v28 = vadd.f32 %v1269_v32, %v1228_v49 }
 0x38f   : > { %v1227_v4 = vadd.f32 %v1219_v44, %v1178_v41 }
 0x390   : > { %2818 = vset.pattern.permute.xlu1 %v4431_v31  ;;  %v1326_v63 = vadd.f32 %v1318_v39, %v1277_v28  ;;  %v1016_v28 = vpop.permute.xlu0 %1015 }
 0x392   : > { %v1375_v43 = vadd.f32 %v1367_v57, %v1326_v63  ;;  %v3798_v41 = vpop.f32.mrf.mxu1 }
 0x394   : > { %v1240_v6 = vpop.permute.xlu1 %1239  ;;  %v1424_v40 = vadd.f32 %v1416_v45, %v1375_v43  ;;  %v3795_v44 = vpop.permute.xlu2 %1090  ;;  %v1107_v45 = vmul.f32 %v3598_v62, %v3765_v11  ;;  %v1173_v11 = vmul.f32 %v3620_v22, %v3676_v24 }
 0x395   : > { %v1268_v31 = vmul.f32 %v3632_v35, %v1240_v6 }
 0x396   : > { %v1473_v12 = vadd.f32 %v1465_v0, %v1424_v40 }
 0x397   : > { %v1276_v60 = vadd.f32 %v1268_v31, %v1227_v4  ;;  %v880_v31 = vmul.f32 %v3582_v46, %v3221_v9  ;;  %v928_v4 = vmul.f32 %v3580_v2, %v3239_v7  ;;  %v978_v9 = vmul.f32 %v3596_v33, %v3231_v61 }
 0x398   : > { %v1559_v32 = vadd.f32 %v3798_v41, %v1473_v12 }
 0x399   : > { %v1325_v13 = vadd.f32 %v1317_v59, %v1276_v60  ;;  %v879_v60 = vmul.f32 %v3582_v46, %v3213_v54  ;;  %v937_v58 = vadd.f32 %v929_v25, %v880_v31  ;;  %v1043_v59 = vmul.f32 %v3588_v27, %v3693_v19 }
 0x39a   : > { %v1108_v54 = vmul.f32 %v3598_v62, %v3702_v53  ;;  %v1248_v53 = vpop.permute.xlu0 %1247  ;;  %v3847_v25 = vperm.slane %v3630_v14, 6 }
 0x39b   : > { %v936_v63 = vadd.f32 %v928_v4, %v879_v60  ;;  %v986_v57 = vadd.f32 %v978_v9, %v937_v58 }
 0x39c   : > { %v3823_v7 = vpop.permute.xlu2 %1255 }
 0x39d   : > { %v1338_v48 = vpop.permute.xlu1 %1337  ;;  %v1051_v43 = vadd.f32 %v1043_v59, %v986_v57  ;;  %v1320_v59 = vmul.f32 %v3637_v15, %v3719_v23  ;;  %v1369_v23 = vmul.f32 %v3642_v30, %v3705_v38 }
 0x39e   : > { %v1366_v55 = vmul.f32 %v3642_v30, %v1338_v48  ;;  %v3819_v48 = vadd.f32 %v3673_v50, %v1559_v32 }
 0x39f   : > { %v1116_v19 = vadd.f32 %v1108_v54, %v1051_v43 }
 0x3a0   : > { %v1374_v36 = vadd.f32 %v1366_v55, %v1325_v13  ;;  %v977_v55 = vmul.f32 %v3596_v33, %v3217_v56  ;;  %v1042_v13 = vmul.f32 %v3588_v27, %v1016_v28  ;;  %v1576_v61 = vmax.f32 %v3819_v48, 0.0 }
 0x3a1   : > { %v3837_v56 = vperm.slane %v3667_v52, 4  ;;  %v1181_v31 = vadd.f32 %v1173_v11, %v1116_v19  ;;  %v1271_v28 = vmul.f32 %v3632_v35, %v3713_v17  ;;  %v1319_v17 = vmul.f32 %v3637_v15, %v3774_v26 }
 0x3a2   : > { %v1423_v6 = vadd.f32 %v1415_v5, %v1374_v36  ;;  %v985_v36 = vadd.f32 %v977_v55, %v936_v63  ;;  %v1270_v63 = vmul.f32 %v3632_v35, %v1248_v53  ;;  %v1444_v54 = vpop.permute.xlu0 %1443  ;;  %v881_v19 = vmul.f32 %v3582_v46, %v3241_v8 }
 0x3a3   : > { %v1044_v8 = vmul.f32 %v3588_v27, %v3785_v18 }
 0x3a4   : > { %v3849_v4 = vpop.permute.xlu2 %1304 }
 0x3a5   : > { %v1436_v16 = vpop.permute.xlu1 %1435 }
 0x3a6   : > { %v1464_v1 = vmul.f32 %v3660_v10, %v1436_v16  ;;  %v1050_v16 = vadd.f32 %v1042_v13, %v985_v36  ;;  %v930_v36 = vmul.f32 %v3580_v2, %v3299_v37  ;;  %v1466_v37 = vmul.f32 %v3660_v10, %v1444_v54 }
 0x3a8   : > { %v1472_v34 = vadd.f32 %v1464_v1, %v1423_v6  ;;  %v4443_v1 = vmax.f32 %v3679_v20, 0.0  ;;  %v1222_v20 = vmul.f32 %v3625_v47, %v3690_v29 }
 0x3aa   : > { %v1558_v49 = vadd.f32 %v3787_v51, %v1472_v34  ;;  %v1115_v34 = vadd.f32 %v1107_v45, %v1050_v16  ;;  %v1230_v9 = vadd.f32 %v1222_v20, %v1181_v31  ;;  %v3865_v45 = vpop.f32.mrf.mxu1 }
 0x3ac   : > { %v3801_v42 = vadd.f32 %v3673_v50, %v1558_v49  ;;  %v1279_v57 = vadd.f32 %v1271_v28, %v1230_v9  ;;  %v1403_v16 = vpop.permute.xlu2 %1402 }
 0x3ae   : > { %v1146_v3 = vpop.permute.xlu1 %1145  ;;  %v1575_v39 = vmax.f32 %v3801_v42, 0.0  ;;  %v1328_v29 = vadd.f32 %v1320_v59, %v1279_v57 }
 0x3af   : > { %v1172_v40 = vmul.f32 %v3620_v22, %v1146_v3 }
 0x3b0   : > { %2650 = vmatmul.msk.f32.gmra.mxu2 %vm1491_vm0, %v1575_v39 }
 0x3b1   : > { %v1180_v32 = vadd.f32 %v1172_v40, %v1115_v34  ;;  %v1377_v40 = vadd.f32 %v1369_v23, %v1328_v29  ;;  %v4445_v34 = vld [vmem:[#allocation16_spill] sm:$0xff]  ;;  %v4448_v23 = vld [vmem:[#allocation6_spill] sm:$0xff] }
 0x3b4   : > { %v1452_v54 = vpop.permute.xlu2 %1451 }
 0x3b7   : > { %v1199_v5 = vpop.permute.xlu1 %1198 }
 0x3b8   : > { %2651 = vmatmul.msk.f32.gmra.mxu2 %vm1491_vm0, %v1576_v61  ;;  %v1221_v12 = vmul.f32 %v3625_v47, %v1199_v5 }
 0x3b9   : > { %v1627_v6 = vpop.f32.mrf.mxu2 }
 0x3ba   : > { %v1651_v0 = vadd.f32 %v1627_v6, %v4443_v1  ;;  %v1229_v24 = vadd.f32 %v1221_v12, %v1180_v32  ;;  %v938_v1 = vadd.f32 %v930_v36, %v881_v19  ;;  %v1467_v12 = vmul.f32 %v3660_v10, %v4445_v34  ;;  %v1207_v32 = vpop.permute.xlu0 %1206  ;;  %v4449_v19 = vld [vmem:[#allocation10_spill] sm:$0xff] }
 0x3bb   : > { %v1321_v34 = vmul.f32 %v3637_v15, %v3849_v4  ;;  %v4453_v4 = vld [vmem:[#allocation11_spill] sm:$0xff] }
 0x3bc   : > { %v1660_v49 = vadd.f32 %v3837_v56, %v1651_v0  ;;  %v1278_v13 = vadd.f32 %v1270_v63, %v1229_v24  ;;  %v4444_v0 = vld [vmem:[#allocation13_spill] sm:$0xff]  ;;  %v1109_v24 = vmul.f32 %v3598_v62, %v3795_v44  ;;  %v3884_v63 = vpop.f32.mrf.mxu1 }
 0x3bd   : > { %v1418_v11 = vmul.f32 %v3653_v21, %v4444_v0 }
 0x3be   : > { %v1668_v3 = vmax.f32 %v1660_v49, 0.0  ;;  %v1327_v5 = vadd.f32 %v1319_v17, %v1278_v13  ;;  %v4446_v49 = vld [vmem:[#allocation5_spill] sm:$0xff]  ;;  %v4447_v13 = vld [vmem:[#allocation7_spill] sm:$0xff] }
 0x3bf   : > { %v979_v31 = vmul.f32 %v3596_v33, %v4446_v49  ;;  %v931_v29 = vmul.f32 %v3580_v2, %v4447_v13 }
 0x3c0   : > { %v1346_v60 = vpop.permute.xlu1 %1345  ;;  %v1677_v58 = vmul.f32 %v3847_v25, %v1668_v3  ;;  %v1426_v3 = vadd.f32 %v1418_v11, %v1377_v40  ;;  %v1272_v40 = vmul.f32 %v3632_v35, %v3823_v7 }
 0x3c1   : > { %v1368_v43 = vmul.f32 %v3642_v30, %v1346_v60  ;;  %v987_v28 = vadd.f32 %v979_v31, %v938_v1  ;;  %v4450_v1 = vld [vmem:[#allocation15_spill] sm:$0xff] }
 0x3c2   : > { %v1685_v55 = vsel %vm1491_vm0, %v1677_v58, 0.0  ;;  %v1475_v60 = vadd.f32 %v1467_v12, %v1426_v3  ;;  %v1045_v0 = vmul.f32 %v3588_v27, %v4450_v1  ;;  %v1354_v11 = vpop.permute.xlu0 %1353  ;;  %v1419_v3 = vmul.f32 %v3653_v21, %v1403_v16  ;;  %v4454_v16 = vld [vmem:[#allocation20_spill] sm:$0xff] }
 0x3c3   : > { %1686 = vadd.xlane.f32.xlu1 %v1685_v55  ;;  %v1376_v6 = vadd.f32 %v1368_v43, %v1327_v5  ;;  %v1052_v9 = vadd.f32 %v1044_v8, %v987_v28  ;;  %v1223_v43 = vmul.f32 %v3625_v47, %v1207_v32  ;;  %v882_v5 = vmul.f32 %v3582_v46, %v4448_v23 }
 0x3c4   : > { %v1561_v17 = vadd.f32 %v3884_v63, %v1475_v60  ;;  %v1370_v31 = vmul.f32 %v3642_v30, %v1354_v11 }
 0x3c5   : > { %v1117_v57 = vadd.f32 %v1109_v24, %v1052_v9  ;;  %v4451_v24 = vld [vmem:[#allocation17_spill] sm:$0xff] }
 0x3c6   : > { %v1110_v60 = vmul.f32 %v3598_v62, %v4451_v24 }
 0x3c8   : > { %v1395_v53 = vpop.permute.xlu1 %1394 }
 0x3c9   : > { %v1417_v26 = vmul.f32 %v3653_v21, %v1395_v53  ;;  %v980_v53 = vmul.f32 %v3596_v33, %v4449_v19 }
 0x3cb   : > { %v1425_v38 = vadd.f32 %v1417_v26, %v1376_v6  ;;  %v939_v26 = vadd.f32 %v931_v29, %v882_v5  ;;  %v1224_v29 = vmul.f32 %v3625_v47, %v4454_v16  ;;  %v1313_v16 = vpop.permute.xlu0 %1312 }
 0x3cd   : > { %v1474_v20 = vadd.f32 %v1466_v37, %v1425_v38  ;;  %v3907_v37 = vadd.f32 %v3673_v50, %v1561_v17  ;;  %v988_v38 = vadd.f32 %v980_v53, %v939_v26  ;;  %v3926_v17 = vpop.f32.mrf.mxu1 }
 0x3cf   : > { %v1560_v58 = vadd.f32 %v3865_v45, %v1474_v20  ;;  %v1053_v32 = vadd.f32 %v1045_v0, %v988_v38  ;;  %v1578_v7 = vmax.f32 %v3907_v37, 0.0  ;;  %v1215_v20 = vpop.permute.xlu2 %1214  ;;  %v4457_v0 = vld [vmem:[#allocation19_spill] sm:$0xff] }
 0x3d0   : > { %v1273_v11 = vmul.f32 %v3632_v35, %v4457_v0 }
 0x3d1   : > { %v1156_v59 = vpop.permute.xlu1 %1155  ;;  %v3887_v55 = vadd.f32 %v3673_v50, %v1560_v58  ;;  %v4452_v58 = vld [vmem:[#allocation18_spill] sm:$0xff]  ;;  %v1118_v13 = vadd.f32 %v1110_v60, %v1053_v32  ;;  %v4459_v60 = vld [vmem:[#allocation21_spill] sm:$0xff] }
 0x3d2   : > { %v1174_v18 = vmul.f32 %v3620_v22, %v1156_v59  ;;  %v1175_v9 = vmul.f32 %v3620_v22, %v4452_v58  ;;  %v883_v59 = vmul.f32 %v3582_v46, %v4453_v4  ;;  %v4456_v46 = vld [vmem:[#allocation9_spill] sm:$0xff]  ;;  %v1225_v58 = vmul.f32 %v3625_v47, %v1215_v20  ;;  %v4460_v4 = vld [vmem:[#allocation22_spill] sm:$0xff] }
 0x3d3   : > { %v1577_v44 = vmax.f32 %v3887_v55, 0.0 }
 0x3d4   : > { %v1182_v36 = vadd.f32 %v1174_v18, %v1117_v57  ;;  %v1468_v57 = vmul.f32 %v3660_v10, %v1452_v54  ;;  %v1183_v5 = vadd.f32 %v1175_v9, %v1118_v13  ;;  %v981_v54 = vmul.f32 %v3596_v33, %v4456_v46  ;;  %v4458_v33 = vld [vmem:[#allocation14_spill] sm:$0xff] }
 0x3d5   : > { %2652 = vmatmul.msk.f32.gmra.mxu2 %vm1491_vm0, %v1577_v44 }
 0x3d6   : > { %v1231_v6 = vadd.f32 %v1223_v43, %v1182_v36  ;;  %v4455_v43 = vld [vmem:[#allocation8_spill] sm:$0xff] }
 0x3d7   : > { %v932_v36 = vmul.f32 %v3580_v2, %v4455_v43 }
 0x3d8   : > { %v1280_v12 = vadd.f32 %v1272_v40, %v1231_v6  ;;  %v1232_v6 = vadd.f32 %v1224_v29, %v1183_v5  ;;  %v1323_v5 = vmul.f32 %v3637_v15, %v1313_v16 }
 0x3d9   : > { %v1036_v49 = vpop.permute.xlu1 %1035  ;;  %v940_v53 = vadd.f32 %v932_v36, %v883_v59  ;;  %v1420_v59 = vmul.f32 %v3653_v21, %v4460_v4 }
 0x3da   : > { %v1329_v8 = vadd.f32 %v1321_v34, %v1280_v12  ;;  %v1046_v26 = vmul.f32 %v3588_v27, %v1036_v49  ;;  %v1264_v34 = vpop.permute.xlu2 %1263  ;;  %v1322_v27 = vmul.f32 %v3637_v15, %v4458_v33 }
 0x3db   : > { %v989_v2 = vadd.f32 %v981_v54, %v940_v53  ;;  %v1274_v13 = vmul.f32 %v3632_v35, %v1264_v34 }
 0x3dc   : > { %v1378_v28 = vadd.f32 %v1370_v31, %v1329_v8  ;;  %v1281_v31 = vadd.f32 %v1273_v11, %v1232_v6 }
 0x3dd   : > { %2653 = vmatmul.msk.f32.gmra.mxu2 %vm1491_vm0, %v1578_v7  ;;  %v1054_v8 = vadd.f32 %v1046_v26, %v989_v2 }
 0x3de   : > { %v1427_v18 = vadd.f32 %v1419_v3, %v1378_v28  ;;  %v1330_v28 = vadd.f32 %v1322_v27, %v1281_v31 }
 0x3e0   : > { %v1476_v23 = vadd.f32 %v1468_v57, %v1427_v18 }
 0x3e1   : > { %v1101_v19 = vpop.permute.xlu1 %1100 }
 0x3e2   : > { %v1562_v40 = vadd.f32 %v3926_v17, %v1476_v23  ;;  %v1111_v12 = vmul.f32 %v3598_v62, %v1101_v19  ;;  %v1371_v62 = vmul.f32 %v3642_v30, %v4459_v60  ;;  %v1362_v18 = vpop.permute.xlu2 %1361  ;;  %v3954_v23 = vpop.f32.mrf.mxu1 }
 0x3e3   : > { %v1372_v53 = vmul.f32 %v3642_v30, %v1362_v18 }
 0x3e4   : > { %v3935_v1 = vadd.f32 %v3673_v50, %v1562_v40  ;;  %v1119_v32 = vadd.f32 %v1111_v12, %v1054_v8  ;;  %v1379_v9 = vadd.f32 %v1371_v62, %v1330_v28 }
 0x3e6   : > { %v1579_v38 = vmax.f32 %v3935_v1, 0.0  ;;  %v1428_v43 = vadd.f32 %v1420_v59, %v1379_v9 }
 0x3e8   : > { %2654 = vmatmul.msk.f32.gmra.mxu2 %vm1491_vm0, %v1579_v38 }
 0x3e9   : > { %v1166_v49 = vpop.permute.xlu1 %1165 }
 0x3ea   : > { %v1176_v3 = vmul.f32 %v3620_v22, %v1166_v49  ;;  %v1460_v6 = vpop.permute.xlu2 %1459  ;;  %v3963_v15 = vpop.f32.mrf.mxu1 }
 0x3eb   : > { %v1470_v0 = vmul.f32 %v3660_v10, %v1460_v6 }
 0x3ec   : > { %v1184_v24 = vadd.f32 %v1176_v3, %v1119_v32 }
 0x3ee   : > { %v1233_v57 = vadd.f32 %v1225_v58, %v1184_v24 }
 0x3f0   : > { %v1282_v36 = vadd.f32 %v1274_v13, %v1233_v57 }
 0x3f2   : > { %v1456_v29 = vpop.permute.xlu1 %1455  ;;  %v1331_v20 = vadd.f32 %v1323_v5, %v1282_v36 }
 0x3f3   : > { %v1469_v22 = vmul.f32 %v3660_v10, %v1456_v29  ;;  %v3994_v29 = vperm.slane %v3667_v52, 7 }
 0x3f4   : > { %v1380_v46 = vadd.f32 %v1372_v53, %v1331_v20 }
 0x3f5   : > { %v1477_v19 = vadd.f32 %v1469_v22, %v1428_v43 }
 0x3f7   : > { %v1563_v47 = vadd.f32 %v3954_v23, %v1477_v19 }
 0x3f9   : > { %v1572_v40 = vadd.f32 %v3673_v50, %v1563_v47 }
 0x3fa   : > { %v1411_v35 = vpop.permute.xlu1 %1410 }
 0x3fb   : > { %v1421_v54 = vmul.f32 %v3653_v21, %v1411_v35  ;;  %v1580_v26 = vmax.f32 %v1572_v40, 0.0 }
 0x3fd   : > { %v1429_v11 = vadd.f32 %v1421_v54, %v1380_v46  ;;  %2655 = vmatmul.msk.f32.gmra.mxu2 %vm1491_vm0, %v1580_v26 }
 0x3ff   : > { %v1478_v34 = vadd.f32 %v1470_v0, %v1429_v11 }
 0x401   : > { %v1564_v2 = vadd.f32 %v3963_v15, %v1478_v34 }
 0x403   : > { %v1573_v30 = vadd.f32 %v3673_v50, %v1564_v2 }
 0x405   : > { %v1581_v12 = vmax.f32 %v1573_v30, 0.0 }
 0x407   : > { %2656 = vmatmul.msk.f32.gmra.mxu2 %vm1491_vm0, %v1581_v12 }
 0x433   : > { %v1630_v31 = vpop.f32.mrf.mxu2 }
 0x434   : > { %v1652_v21 = vadd.f32 %v1630_v31, %v1575_v39  ;;  %v1758_v31 = vperm.slane %v3630_v14, 4 }
 0x436   : > { %v1661_v8 = vadd.f32 %v3837_v56, %v1652_v21  ;;  %v1687_v43 = vpop.xlane.xlu1 %1686 }
 0x437   : > { %v3997_v36 = vadd.f32 %v3994_v29, %v1687_v43 }
 0x438   : > { %v1669_v10 = vmax.f32 %v1661_v8, 0.0 }
 0x43a   : > { %v1678_v33 = vmul.f32 %v3847_v25, %v1669_v10  ;;  %v1807_v10 = vperm.slane %v3667_v52, 2 }
 0x43b   : > { %v1633_v27 = vpop.f32.mrf.mxu2 }
 0x43c   : > { %v1653_v49 = vadd.f32 %v1633_v27, %v1576_v61  ;;  %v1688_v32 = vsel %vm1491_vm0, %v1678_v33, 0.0 }
 0x43d   : > { %1689 = vadd.xlane.f32.xlu0 %v1688_v32 }
 0x43e   : > { %v1662_v50 = vadd.f32 %v3837_v56, %v1653_v49 }
 0x440   : > { %v1670_v3 = vmax.f32 %v1662_v50, 0.0 }
 0x442   : > { %v1679_v28 = vmul.f32 %v3847_v25, %v1670_v3 }
 0x444   : > { %v1691_v42 = vsel %vm1491_vm0, %v1679_v28, 0.0 }
 0x445   : > { %1692 = vadd.xlane.f32.xlu2 %v1691_v42 }
 0x458   : > { %v1636_v39 = vpop.f32.mrf.mxu2 }
 0x459   : > { %v1654_v24 = vadd.f32 %v1636_v39, %v1577_v44 }
 0x45b   : > { %v1663_v60 = vadd.f32 %v3837_v56, %v1654_v24 }
 0x45d   : > { %v1671_v62 = vmax.f32 %v1663_v60, 0.0 }
 0x45f   : > { %v1680_v48 = vmul.f32 %v3847_v25, %v1671_v62 }
 0x460   : > { %v1639_v61 = vpop.f32.mrf.mxu2 }
 0x461   : > { %v1655_v58 = vadd.f32 %v1639_v61, %v1578_v7  ;;  %v1694_v9 = vsel %vm1491_vm0, %v1680_v48, 0.0 }
 0x462   : > { %1695 = vadd.xlane.f32.xlu1 %v1694_v9 }
 0x463   : > { %v1664_v4 = vadd.f32 %v3837_v56, %v1655_v58 }
 0x465   : > { %v1672_v59 = vmax.f32 %v1664_v4, 0.0 }
 0x467   : > { %v1681_v57 = vmul.f32 %v3847_v25, %v1672_v59  ;;  %v4461_v59 = vld [vmem:[#allocation12_spill] sm:$0xff] }
 0x469   : > { %v1697_v55 = vsel %vm1491_vm0, %v1681_v57, 0.0 }
 0x46a   : > { %1698 = vadd.xlane.f32.xlu0 %v1697_v55 }
 0x46b   : > { %v1642_v44 = vpop.f32.mrf.mxu2 }
 0x46c   : > { %v1656_v18 = vadd.f32 %v1642_v44, %v1579_v38 }
 0x46e   : > { %v1665_v13 = vadd.f32 %v3837_v56, %v1656_v18 }
 0x470   : > { %v1673_v16 = vmax.f32 %v1665_v13, 0.0 }
 0x472   : > { %v1682_v37 = vmul.f32 %v3847_v25, %v1673_v16 }
 0x474   : > { %v1700_v7 = vsel %vm1491_vm0, %v1682_v37, 0.0 }
 0x475   : > { %1701 = vadd.xlane.f32.xlu2 %v1700_v7 }
 0x47b   : > { %1720 = vperm.xlu1 %2818, %v3997_v36  }
 0x480   : > { %v1645_v22 = vpop.f32.mrf.mxu2 }
 0x481   : > { %v1657_v1 = vadd.f32 %v1645_v22, %v1580_v26 }
 0x483   : > { %v1666_v38 = vadd.f32 %v3837_v56, %v1657_v1 }
 0x485   : > { %v1674_v5 = vmax.f32 %v1666_v38, 0.0 }
 0x487   : > { %v1683_v19 = vmul.f32 %v3847_v25, %v1674_v5 }
 0x489   : > { %v1703_v47 = vsel %vm1491_vm0, %v1683_v19, 0.0 }
 0x48a   : > { %1704 = vadd.xlane.f32.xlu0 %v1703_v47  ;;  %v1648_v20 = vpop.f32.mrf.mxu2 }
 0x48b   : > { %v1658_v53 = vadd.f32 %v1648_v20, %v1581_v12 }
 0x48d   : > { %v1667_v40 = vadd.f32 %v3837_v56, %v1658_v53 }
 0x48f   : > { %v1675_v6 = vmax.f32 %v1667_v40, 0.0 }
 0x491   : > { %v1684_v35 = vmul.f32 %v3847_v25, %v1675_v6  ;;  %v2660_v6 = vld [vmem:[%s4408_s4 + $0x38] sm:$0xff] }
 0x492   : > { %1885 = vmatpush.msrb.mxu3 %v2660_v6 }
 0x493   : > { %v1706_v46 = vsel %vm1491_vm0, %v1684_v35, 0.0  ;;  %v2659_v35 = vld [vmem:[%s4408_s4 + $0x30] sm:$0xff] }
 0x494   : > { %1707 = vadd.xlane.f32.xlu0 %v1706_v46  ;;  %v2658_v46 = vld [vmem:[%s4408_s4 + $0x28] sm:$0xff]  ;;  %1886 = vmatpush.msrb.mxu3 %v2659_v35 }
 0x496   : > { %1887 = vmatpush.msrb.mxu3 %v2658_v46 }
 0x4b0   : > { %v1690_v54 = vpop.xlane.xlu0 %1689 }
 0x4b1   : > { %v4007_v26 = vadd.f32 %v3994_v29, %v1690_v54  ;;  %v2657_v54 = vld [vmem:[%s4408_s4 + $0x20] sm:$0xff] }
 0x4b2   : > { %1888 = vmatpush.msrb.mxu3 %v2657_v54 }
 0x4b3   : > { %1725 = vperm.xlu2 %2819, %v4007_v26  }
 0x4b8   : > { %v1693_v0 = vpop.xlane.xlu2 %1692 }
 0x4b9   : > { %v4011_v11 = vadd.f32 %v3994_v29, %v1693_v0 }
 0x4bb   : > { %1730 = vperm.xlu0 %2820, %v4011_v11  }
 0x4d5   : > { %v1696_v34 = vpop.xlane.xlu1 %1695 }
 0x4d6   : > { %v4015_v56 = vadd.f32 %v3994_v29, %v1696_v34 }
 0x4d8   : > { %1735 = vperm.xlu1 %2818, %v4015_v56  }
 0x4dd   : > { %v1699_v25 = vpop.xlane.xlu0 %1698 }
 0x4de   : > { %v4019_v2 = vadd.f32 %v3994_v29, %v1699_v25 }
 0x4e0   : > { %1740 = vperm.xlu2 %2819, %v4019_v2  }
 0x4e8   : > { %v1702_v30 = vpop.xlane.xlu2 %1701 }
 0x4e9   : > { %v4023_v12 = vadd.f32 %v3994_v29, %v1702_v30 }
 0x4eb   : > { %1745 = vperm.xlu1 %2818, %v4023_v12  }
 0x4ed   : > { %v1721_v21 = vpop.permute.xlu1 %1720 }
 0x4ee   : > { %v1759_v8 = vmul.f32 %v1758_v31, %v1721_v21 }
 0x4f0   : > { %1775 = vrot.lane.b32.xlu2 %v1759_v8, %s2913_s16 }
 0x4f3   : > { %1809 = vrot.lane.b32.xlu1 %v1807_v10, %s2913_s16 }
 0x4fd   : > { %v1705_v33 = vpop.xlane.xlu0 %1704 }
 0x4fe   : > { %v4031_v27 = vadd.f32 %v3994_v29, %v1705_v33 }
 0x500   : > { %1750 = vperm.xlu2 %2819, %v4031_v27  }
 0x507   : > { %v1708_v49 = vpop.xlane.xlu0 %1707 }
 0x508   : > { %v4035_v32 = vadd.f32 %v3994_v29, %v1708_v49 }
 0x50a   : > { %1755 = vperm.xlu2 %2819, %v4035_v32  }
 0x50d   : > { %v1726_v50 = vpop.permute.xlu2 %1725 }
 0x50e   : > { %v1760_v3 = vmul.f32 %v1758_v31, %v1726_v50 }
 0x510   : > { %1777 = vrot.lane.b32.xlu1 %v1760_v3, %s2913_s16 }
 0x52d   : > { %v1731_v28 = vpop.permute.xlu0 %1730 }
 0x52e   : > { %v1761_v42 = vmul.f32 %v1758_v31, %v1731_v28 }
 0x530   : > { %1779 = vrot.lane.b32.xlu0 %v1761_v42, %s2913_s16 }
 0x53a   : > { %v1741_v39 = vpop.permute.xlu2 %1740 }
 0x53b   : > { %v1763_v24 = vmul.f32 %v1758_v31, %v1741_v39 }
 0x53d   : > { %1783 = vrot.lane.b32.xlu2 %v1763_v24, %s2913_s16 }
 0x54a   : > { %v1736_v60 = vpop.permute.xlu1 %1735  ;;  %v1776_v48 = vpop.permute.xlu2 %1775 }
 0x54b   : > { %v1762_v62 = vmul.f32 %v1758_v31, %v1736_v60  ;;  %v1799_v57 = vadd.f32 %v1776_v48, %v4461_v59 }
 0x54d   : > { %1781 = vrot.lane.b32.xlu1 %v1762_v62, %s2913_s16 }
 0x55a   : > { %v1751_v61 = vpop.permute.xlu2 %1750 }
 0x55b   : > { %v1765_v58 = vmul.f32 %v1758_v31, %v1751_v61  ;;  %v1954_v61 = vperm.slane %v3667_v52, 5 }
 0x55d   : > { %v1746_v9 = vpop.permute.xlu1 %1745  ;;  %1787 = vrot.lane.b32.xlu2 %v1765_v58, %s2913_s16  ;;  %v1975_v58 = vperm.slane %v3630_v14, 7 }
 0x55e   : > { %v1764_v4 = vmul.f32 %v1758_v31, %v1746_v9 }
 0x560   : > { %1785 = vrot.lane.b32.xlu0 %v1764_v4, %s2913_s16 }
 0x564   : > { %v1756_v13 = vpop.permute.xlu2 %1755 }
 0x565   : > { %v1810_v55 = vpop.permute.xlu1 %1809  ;;  %v1766_v16 = vmul.f32 %v1758_v31, %v1756_v13 }
 0x566   : > { %v4045_v44 = vadd.f32 %v1810_v55, %v1799_v57 }
 0x568   : > { %v1820_v18 = vmax.f32 %v4045_v44, 0.0 }
 0x56a   : > { %1841 = vrot.lane.b32.xlu1 %v1820_v18, %s2914_s13 }
 0x572   : > { %1789 = vrot.lane.b32.xlu1 %v1766_v16, %s2913_s16 }
 0x582   : > { %v1778_v37 = vpop.permute.xlu1 %1777 }
 0x583   : > { %v1800_v7 = vadd.f32 %v1778_v37, %v3787_v51 }
 0x585   : > { %v4053_v43 = vadd.f32 %v1810_v55, %v1800_v7 }
 0x587   : > { %v1821_v22 = vmax.f32 %v4053_v43, 0.0 }
 0x589   : > { %1843 = vrot.lane.b32.xlu0 %v1821_v22, %s2914_s13 }
 0x597   : > { %v1784_v1 = vpop.permute.xlu2 %1783 }
 0x598   : > { %v1803_v38 = vadd.f32 %v1784_v1, %v3884_v63 }
 0x59a   : > { %v4060_v5 = vadd.f32 %v1810_v55, %v1803_v38 }
 0x59c   : > { %v1824_v19 = vmax.f32 %v4060_v5, 0.0 }
 0x59e   : > { %1849 = vrot.lane.b32.xlu1 %v1824_v19, %s2914_s13 }
 0x5a2   : > { %v1780_v47 = vpop.permute.xlu0 %1779 }
 0x5a3   : > { %v1801_v20 = vadd.f32 %v1780_v47, %v3798_v41 }
 0x5a5   : > { %v4067_v53 = vadd.f32 %v1810_v55, %v1801_v20 }
 0x5a7   : > { %v1822_v40 = vmax.f32 %v4067_v53, 0.0 }
 0x5a9   : > { %1845 = vrot.lane.b32.xlu2 %v1822_v40, %s2914_s13 }
 0x5b7   : > { %v1788_v25 = vpop.permute.xlu2 %1787 }
 0x5b8   : > { %v1805_v31 = vadd.f32 %v1788_v25, %v3954_v23 }
 0x5ba   : > { %v4093_v8 = vadd.f32 %v1810_v55, %v1805_v31 }
 0x5bc   : > { %v1826_v10 = vmax.f32 %v4093_v8, 0.0 }
 0x5bf   : > { %v1782_v0 = vpop.permute.xlu1 %1781 }
 0x5c0   : > { %v1802_v34 = vadd.f32 %v1782_v0, %v3865_v45 }
 0x5c2   : > { %v4086_v30 = vadd.f32 %v1810_v55, %v1802_v34 }
 0x5c4   : > { %v1823_v21 = vmax.f32 %v4086_v30, 0.0 }
 0x5c6   : > { %1847 = vrot.lane.b32.xlu0 %v1823_v21, %s2914_s13 }
 0x5ce   : > { %1853 = vrot.lane.b32.xlu0 %v1826_v10, %s2914_s13 }
 0x5d2   : > { %v1786_v33 = vpop.permute.xlu0 %1785 }
 0x5d3   : > { %v1804_v49 = vadd.f32 %v1786_v33, %v3926_v17 }
 0x5d5   : > { %v4100_v50 = vadd.f32 %v1810_v55, %v1804_v49 }
 0x5d6   : > { %1956 = vrot.lane.b32.xlu0 %v1954_v61, %s2913_s16 }
 0x5d7   : > { %v1825_v3 = vmax.f32 %v4100_v50, 0.0 }
 0x5d9   : > { %1851 = vrot.lane.b32.xlu2 %v1825_v3, %s2914_s13 }
 0x5dc   : > { %v1842_v28 = vpop.permute.xlu1 %1841 }
 0x5dd   : > { %2661 = vmatmul.msk.f32.vlgmr.msrb.gmra.mxu3 %vm1491_vm0, %v1842_v28 }
 0x5e4   : > { %v1790_v42 = vpop.permute.xlu1 %1789 }
 0x5e5   : > { %v1806_v39 = vadd.f32 %v1790_v42, %v3963_v15 }
 0x5e7   : > { %v4108_v24 = vadd.f32 %v1810_v55, %v1806_v39 }
 0x5e9   : > { %v1827_v60 = vmax.f32 %v4108_v24, 0.0 }
 0x5eb   : > { %1855 = vrot.lane.b32.xlu1 %v1827_v60, %s2914_s13 }
 0x5f3   : > { %1977 = vrot.lane.b32.xlu1 %v1975_v58, %s2913_s16 }
 0x5fb   : > { %v1844_v62 = vpop.permute.xlu0 %1843 }
 0x5fc   : > { %2662 = vmatmul.msk.f32.gmra.mxu3 %vm1491_vm0, %v1844_v62 }
 0x603   : > { %v1846_v48 = vpop.permute.xlu2 %1845 }
 0x604   : > { %2663 = vmatmul.msk.f32.gmra.mxu3 %vm1491_vm0, %v1846_v48 }
 0x610   : > { %v1850_v4 = vpop.permute.xlu1 %1849 }
 0x633   : > { %v1852_v57 = vpop.permute.xlu2 %1851 }
 0x638   : > { %v1848_v9 = vpop.permute.xlu0 %1847 }
 0x639   : > { %2664 = vmatmul.msk.f32.gmra.mxu3 %vm1491_vm0, %v1848_v9 }
 0x640   : > { %v1854_v55 = vpop.permute.xlu0 %1853 }
 0x641   : > { %2665 = vmatmul.msk.f32.gmra.mxu3 %vm1491_vm0, %v1850_v4 }
 0x648   : > { %v1957_v46 = vpop.permute.xlu0 %1956 }
 0x649   : > { %2666 = vmatmul.msk.f32.gmra.mxu3 %vm1491_vm0, %v1852_v57 }
 0x651   : > { %2667 = vmatmul.msk.f32.gmra.mxu3 %vm1491_vm0, %v1854_v55 }
 0x65d   : > { %v1856_v13 = vpop.permute.xlu1 %1855 }
 0x65e   : > { %2668 = vmatmul.msk.f32.gmra.mxu3 %vm1491_vm0, %v1856_v13 }
 0x660   : > { %v1890_v14 = vpop.f32.mrf.mxu3 }
 0x661   : > { %1922 = vrot.lane.b32.xlu2 %v1890_v14, %s2913_s16 }
 0x665   : > { %v1978_v34 = vpop.permute.xlu1 %1977 }
 0x67f   : > { %v1893_v52 = vpop.f32.mrf.mxu3 }
 0x680   : > { %1924 = vrot.lane.b32.xlu2 %v1893_v52, %s2913_s16 }
 0x687   : > { %v1896_v16 = vpop.f32.mrf.mxu3 }
 0x688   : > { %1926 = vrot.lane.b32.xlu0 %v1896_v16, %s2913_s16 }
 0x6bb   : > { %v1923_v38 = vpop.permute.xlu2 %1922 }
 0x6bc   : > { %v1899_v37 = vpop.f32.mrf.mxu3  ;;  %v1946_v35 = vadd.f32 %v1923_v38, %v1820_v18 }
 0x6bd   : > { %1928 = vrot.lane.b32.xlu1 %v1899_v37, %s2913_s16 }
 0x6be   : > { %v1959_v25 = vadd.f32 %v1957_v46, %v1946_v35 }
 0x6c0   : > { %v1967_v49 = vmax.f32 %v1959_v25, 0.0 }
 0x6c2   : > { %v1980_v28 = vmul.f32 %v1978_v34, %v1967_v49 }
 0x6c4   : > { %v1902_v7 = vpop.f32.mrf.mxu3 }
 0x6c5   : > { %1930 = vrot.lane.b32.xlu2 %v1902_v7, %s2913_s16 }
 0x6cc   : > { %v1905_v1 = vpop.f32.mrf.mxu3 }
 0x6cd   : > { %1932 = vrot.lane.b32.xlu0 %v1905_v1, %s2913_s16 }
 0x6d4   : > { %v1908_v47 = vpop.f32.mrf.mxu3 }
 0x6d5   : > { %1934 = vrot.lane.b32.xlu2 %v1908_v47, %s2913_s16 }
 0x6da   : > { %v1925_v20 = vpop.permute.xlu2 %1924 }
 0x6db   : > { %v1947_v6 = vadd.f32 %v1925_v20, %v1821_v22 }
 0x6dd   : > { %v1960_v54 = vadd.f32 %v1957_v46, %v1947_v6 }
 0x6df   : > { %v1968_v0 = vmax.f32 %v1960_v54, 0.0 }
 0x6e1   : > { %v1981_v31 = vmul.f32 %v1978_v34, %v1968_v0  ;;  %v1911_v33 = vpop.f32.mrf.mxu3 }
 0x6e2   : > { %1936 = vrot.lane.b32.xlu1 %v1911_v33, %s2913_s16  ;;  %s2510_s16 = scalar_lea.hbm %s4410_s6, %s2899_s24  ;;  %s2849_s24 = scalar_lea.hbm %s4410_s6, 2 }
 0x6e3   : > { %1998 = vrot.lane.b32.xlu0 %v1981_v31, %s2914_s13  ;;  %s2514_s20 = sshll.u32 %s2510_s16, 4  ;;  %s2515_s20 = int_to_ptr.hbm [resolvable:$true] %s2514_s20 }
 0x6e4   : > { %s2843_s28 = sshra.s32 %s2515_s20, 4  ;;  %s2844_s28 = int_to_ptr.hbm [resolvable:$true] %s2843_s28 }
 0x6e5   : > { %s2845_s30 = scalar_lea.hbm %s2844_s28, 1  ;;  %p2850_p1 = scmp.lt.s32.totalorder %s2844_s28, %s4410_s6 }
 0x6e6   : > { %p2846_p12 = scmp.ne.s32.totalorder %s2844_s28, %s2845_s30  ;;  %p2851_p2 = scmp.lt.s32.totalorder %s2849_s24, %s2845_s30 }
 0x6e8   : > { %p2847_p13 = pnand %p2846_p12, %p2993_p4  ;;  %p2852_p3 = por %p2851_p2, %p2850_p1 }
 0x6ea   : > { %1996 = vrot.lane.b32.xlu1 %v1980_v28, %s2914_s13  ;;  %p2848_p0 = pneg %p2847_p13 }
 0x6ec   : > { %p2853_p5 = pnand %p2852_p3, %p2848_p0 }
 0x6fa   : > { %v1927_v43 = vpop.permute.xlu0 %1926 }
 0x6fb   : > { %v1948_v44 = vadd.f32 %v1927_v43, %v1822_v40 }
 0x6fd   : > { %v1961_v18 = vadd.f32 %v1957_v46, %v1948_v44 }
 0x6ff   : > { %v1969_v22 = vmax.f32 %v1961_v18, 0.0 }
 0x701   : > { %v1982_v42 = vmul.f32 %v1978_v34, %v1969_v22 }
 0x703   : > { %2000 = vrot.lane.b32.xlu2 %v1982_v42, %s2914_s13 }
 0x71f   : > { %v1931_v39 = vpop.permute.xlu2 %1930 }
 0x720   : > { %v1950_v62 = vadd.f32 %v1931_v39, %v1824_v19 }
 0x722   : > { %v1963_v48 = vadd.f32 %v1957_v46, %v1950_v62 }
 0x724   : > { %v1971_v61 = vmax.f32 %v1963_v48, 0.0 }
 0x726   : > { %v1984_v58 = vmul.f32 %v1978_v34, %v1971_v61 }
 0x728   : > { %2004 = vrot.lane.b32.xlu1 %v1984_v58, %s2914_s13 }
 0x72f   : > { %v1929_v9 = vpop.permute.xlu1 %1928  ;;  %v1935_v4 = vpop.permute.xlu2 %1934 }
 0x730   : > { %v1949_v53 = vadd.f32 %v1929_v9, %v1823_v21  ;;  %v1952_v40 = vadd.f32 %v1935_v4, %v1826_v10 }
 0x732   : > { %v1962_v57 = vadd.f32 %v1957_v46, %v1949_v53  ;;  %v1965_v55 = vadd.f32 %v1957_v46, %v1952_v40 }
 0x734   : > { %v1970_v13 = vmax.f32 %v1962_v57, 0.0  ;;  %v1973_v14 = vmax.f32 %v1965_v55, 0.0 }
 0x736   : > { %v1983_v52 = vmul.f32 %v1978_v34, %v1970_v13  ;;  %v1986_v5 = vmul.f32 %v1978_v34, %v1973_v14 }
 0x738   : > { %2002 = vrot.lane.b32.xlu0 %v1983_v52, %s2914_s13  ;;  %2008 = vrot.lane.b32.xlu1 %v1986_v5, %s2914_s13 }
 0x73f   : > { %v1933_v19 = vpop.permute.xlu0 %1932 }
 0x740   : > { %v1951_v16 = vadd.f32 %v1933_v19, %v1825_v3 }
 0x742   : > { %v1964_v37 = vadd.f32 %v1957_v46, %v1951_v16 }
 0x744   : > { %v1972_v30 = vmax.f32 %v1964_v37, 0.0 }
 0x746   : > { %v1985_v21 = vmul.f32 %v1978_v34, %v1972_v30 }
 0x748   : > { %2006 = vrot.lane.b32.xlu2 %v1985_v21, %s2914_s13 }
 0x754   : > { %v1937_v8 = vpop.permute.xlu1 %1936 }
 0x755   : > { %v1953_v10 = vadd.f32 %v1937_v8, %v1827_v60  ;;  %v1999_v50 = vpop.permute.xlu0 %1998 }
 0x756   : > { %v2023_v3 = vsel %vm1491_vm0, %v1999_v50, 0.0 }
 0x757   : > { %v1966_v7 = vadd.f32 %v1957_v46, %v1953_v10 }
 0x759   : > { %v1974_v1 = vmax.f32 %v1966_v7, 0.0 }
 0x75b   : > { %v1987_v38 = vmul.f32 %v1978_v34, %v1974_v1 }
 0x75c   : > { %v1997_v47 = vpop.permute.xlu1 %1996 }
 0x75d   : > { %2010 = vrot.lane.b32.xlu1 %v1987_v38, %s2914_s13  ;;  %v2020_v20 = vsel %vm1491_vm0, %v1997_v47, 0.0  ;;  %v2001_v6 = vpop.permute.xlu2 %2000  ;;  %s307_s13 = scalar_lea.vmem [#allocation2], %s306_s17 }
 0x75e   : > { %v2026_v35 = vsel %vm1491_vm0, %v2001_v6, 0.0  ;;  %s2512_s19 = sshll.u32 %s307_s13, 4  ;;  %s2513_s19 = int_to_ptr.vmem [resolvable:$true] %s2512_s19 }
 0x762   : > { %2021 = vadd.xlane.f32.xlu0 %v2020_v20 }
 0x771   : > { %2024 = vadd.xlane.f32.xlu2 %v2023_v3 }
 0x787   : > { %2027 = vadd.xlane.f32.xlu1 %v2026_v35 }
 0x79a   : > { %v2005_v54 = vpop.permute.xlu1 %2004 }
 0x79b   : > { %v2032_v24 = vsel %vm1491_vm0, %v2005_v54, 0.0 }
 0x79c   : > { %2033 = vadd.xlane.f32.xlu2 %v2032_v24 }
 0x7a2   : > { %v2007_v0 = vpop.permute.xlu2 %2006 }
 0x7a3   : > { %v2035_v34 = vsel %vm1491_vm0, %v2007_v0, 0.0 }
 0x7aa   : > { %v2003_v60 = vpop.permute.xlu0 %2002  ;;  %v2009_v25 = vpop.permute.xlu1 %2008 }
 0x7ab   : > { %v2029_v46 = vsel %vm1491_vm0, %v2003_v60, 0.0  ;;  %v2038_v31 = vsel %vm1491_vm0, %v2009_v25, 0.0 }
 0x7ac   : > { %2030 = vadd.xlane.f32.xlu0 %v2029_v46 }
 0x7b4   : > { %2036 = vadd.xlane.f32.xlu0 %v2035_v34 }
 0x7bc   : > { %2039 = vadd.xlane.f32.xlu0 %v2038_v31 }
 0x7cf   : > { %v2011_v33 = vpop.permute.xlu1 %2010 }
 0x7d0   : > { %v2041_v49 = vsel %vm1491_vm0, %v2011_v33, 0.0 }
 0x7d1   : > { %2042 = vadd.xlane.f32.xlu0 %v2041_v49 }
 0x7d5   : > { %v2022_v28 = vpop.xlane.xlu0 %2021 }
 0x7d6   : > { %v2044_v43 = vadd.f32 %v2022_v28, %v3994_v29 }
 0x7d8   : > { %2060 = vrot.lane.b32.xlu2 %v2044_v43, %s2915_s15 }
 0x7e4   : > { %v2025_v44 = vpop.xlane.xlu2 %2024 }
 0x7e5   : > { %v2045_v18 = vadd.f32 %v2025_v44, %v3994_v29 }
 0x7e7   : > { %2062 = vrot.lane.b32.xlu1 %v2045_v18, %s2915_s15 }
 0x7fa   : > { %v2028_v22 = vpop.xlane.xlu1 %2027 }
 0x7fb   : > { %v2046_v42 = vadd.f32 %v2028_v22, %v3994_v29 }
 0x7fd   : > { %2064 = vrot.lane.b32.xlu0 %v2046_v42, %s2915_s15 }
 0x80f   : > { %v2034_v39 = vpop.xlane.xlu2 %2033 }
 0x810   : > { %v2048_v62 = vadd.f32 %v2034_v39, %v3994_v29 }
 0x812   : > { %2068 = vrot.lane.b32.xlu1 %v2048_v62, %s2915_s15 }
 0x81f   : > { %v2031_v48 = vpop.xlane.xlu0 %2030 }
 0x820   : > { %v2047_v61 = vadd.f32 %v2031_v48, %v3994_v29 }
 0x822   : > { %2066 = vrot.lane.b32.xlu2 %v2047_v61, %s2915_s15 }
 0x827   : > { %v2037_v58 = vpop.xlane.xlu0 %2036 }
 0x828   : > { %v2049_v9 = vadd.f32 %v2037_v58, %v3994_v29 }
 0x82a   : > { %2070 = vrot.lane.b32.xlu2 %v2049_v9, %s2915_s15 }
 0x82f   : > { %v2040_v4 = vpop.xlane.xlu0 %2039 }
 0x830   : > { %v2050_v53 = vadd.f32 %v2040_v4, %v3994_v29  ;;  %v2670_v4 = vld [vmem:[%s4408_s4 + $0x48] sm:$0xff] }
 0x832   : > { %v2061_v40 = vpop.permute.xlu2 %2060  ;;  %2072 = vrot.lane.b32.xlu2 %v2050_v53, %s2915_s15  ;;  %v2669_v53 = vld [vmem:[%s4408_s4 + $0x40] sm:$0xff] }
 0x833   : > { %v4173_v57 = vadd.f32 %v2061_v40, %v3997_v36 }
 0x835   : > { %2094 = vperm.xlu1 %2818, %v4173_v57  }
 0x844   : > { %v2043_v55 = vpop.xlane.xlu0 %2042 }
 0x845   : > { %v2051_v13 = vadd.f32 %v2043_v55, %v3994_v29 }
 0x847   : > { %2074 = vrot.lane.b32.xlu1 %v2051_v13, %s2915_s15  ;;  %s2917_s15 = smov 126  }
 0x859   : > { %v2063_v14 = vpop.permute.xlu1 %2062 }
 0x85a   : > { %v4178_v52 = vadd.f32 %v2063_v14, %v4007_v26 }
 0x85c   : > { %2099 = vperm.xlu0 %2820, %v4178_v52  }
 0x86f   : > { %v2065_v5 = vpop.permute.xlu0 %2064 }
 0x870   : > { %v4182_v19 = vadd.f32 %v2065_v5, %v4011_v11  ;;  %v4200_v11 = vld [vmem:[%s4409_s5 + $0x10] sm:$0xff] }
 0x872   : > { %2104 = vperm.xlu2 %2819, %v4182_v19  }
 0x87c   : > { %v2067_v36 = vpop.permute.xlu2 %2066 }
 0x87d   : > { %v4186_v16 = vadd.f32 %v2067_v36, %v4015_v56  ;;  %v2181_v56 = vperm.slane %v4200_v11, 3 }
 0x87f   : > { %2109 = vperm.xlu0 %2820, %v4186_v16  }
 0x884   : > { %v2069_v37 = vpop.permute.xlu1 %2068  ;;  %v2071_v30 = vpop.permute.xlu2 %2070 }
 0x885   : > { %v4190_v21 = vadd.f32 %v2069_v37, %v4019_v2  ;;  %v4193_v26 = vadd.f32 %v2071_v30, %v4023_v12  ;;  %v2828_v2 = vld [vmem:[%s4409_s5 + $0x8] sm:$0xff] }
 0x886   : > { %v2132_v12 = vperm.slane %v2828_v2, 5 }
 0x887   : > { %2114 = vperm.xlu1 %2818, %v4190_v21   ;;  %2119 = vperm.xlu2 %2819, %v4193_v26  }
 0x88c   : > { %v2073_v8 = vpop.permute.xlu2 %2072 }
 0x88d   : > { %v4204_v10 = vadd.f32 %v2073_v8, %v4031_v27 }
 0x88f   : > { %2124 = vperm.xlu2 %2819, %v4204_v10   ;;  %2183 = vrot.lane.b32.xlu1 %v2181_v56, %s2916_s11 }
 0x8a7   : > { %v2095_v7 = vpop.permute.xlu1 %2094 }
 0x8a8   : > { %v2133_v1 = vmul.f32 %v2132_v12, %v2095_v7 }
 0x8aa   : > { %2149 = vrot.lane.b32.xlu0 %v2133_v1, %s2916_s11 }
 0x8b9   : > { %v2075_v38 = vpop.permute.xlu1 %2074 }
 0x8ba   : > { %v4213_v47 = vadd.f32 %v2075_v38, %v4035_v32 }
 0x8bc   : > { %2129 = vperm.xlu1 %2818, %v4213_v47  }
 0x8cc   : > { %v2105_v27 = vpop.permute.xlu2 %2104 }
 0x8cd   : > { %v2135_v20 = vmul.f32 %v2132_v12, %v2105_v27 }
 0x8ce   : > { %v2100_v50 = vpop.permute.xlu0 %2099 }
 0x8cf   : > { %v2134_v3 = vmul.f32 %v2132_v12, %v2100_v50  ;;  %2153 = vrot.lane.b32.xlu2 %v2135_v20, %s2916_s11 }
 0x8d1   : > { %2151 = vrot.lane.b32.xlu0 %v2134_v3, %s2916_s11 }
 0x8e1   : > { %v2120_v6 = vpop.permute.xlu2 %2119 }
 0x8e2   : > { %v2138_v35 = vmul.f32 %v2132_v12, %v2120_v6  ;;  %v2328_v6 = vperm.slane %v4200_v11, 6 }
 0x8e4   : > { %2159 = vrot.lane.b32.xlu2 %v2138_v35, %s2916_s11  ;;  %v2349_v35 = vperm.slane %v4200_v11, 0 }
 0x8e9   : > { %v2125_v46 = vpop.permute.xlu2 %2124 }
 0x8ea   : > { %v2139_v0 = vmul.f32 %v2132_v12, %v2125_v46 }
 0x8f1   : > { %v2110_v54 = vpop.permute.xlu0 %2109 }
 0x8f2   : > { %v2136_v24 = vmul.f32 %v2132_v12, %v2110_v54 }
 0x8f4   : > { %2155 = vrot.lane.b32.xlu0 %v2136_v24, %s2916_s11 }
 0x8f9   : > { %v2115_v32 = vpop.permute.xlu1 %2114 }
 0x8fa   : > { %v2137_v60 = vmul.f32 %v2132_v12, %v2115_v32 }
 0x8fc   : > { %2157 = vrot.lane.b32.xlu1 %v2137_v60, %s2916_s11 }
 0x901   : > { %v2184_v25 = vpop.permute.xlu1 %2183 }
 0x904   : > { %2161 = vrot.lane.b32.xlu1 %v2139_v0, %s2916_s11 }
 0x91c   : > { %v2150_v34 = vpop.permute.xlu0 %2149 }
 0x91d   : > { %v2173_v31 = vadd.f32 %v2150_v34, %v4461_v59 }
 0x91f   : > { %v4223_v33 = vadd.f32 %v2184_v25, %v2173_v31 }
 0x921   : > { %v2194_v49 = vmax.f32 %v4223_v33, 0.0 }
 0x923   : > { %2215 = vrot.lane.b32.xlu0 %v2194_v49, %s2916_s11 }
 0x929   : > { %v2154_v28 = vpop.permute.xlu2 %2153 }
 0x92a   : > { %v2175_v43 = vadd.f32 %v2154_v28, %v3798_v41 }
 0x92c   : > { %v4230_v44 = vadd.f32 %v2184_v25, %v2175_v43 }
 0x92e   : > { %v2196_v18 = vmax.f32 %v4230_v44, 0.0  ;;  %v2130_v22 = vpop.permute.xlu1 %2129 }
 0x92f   : > { %v2140_v42 = vmul.f32 %v2132_v12, %v2130_v22 }
 0x930   : > { %2219 = vrot.lane.b32.xlu1 %v2196_v18, %s2916_s11 }
 0x931   : > { %2163 = vrot.lane.b32.xlu0 %v2140_v42, %s2916_s11 }
 0x93e   : > { %v2160_v59 = vpop.permute.xlu2 %2159 }
 0x93f   : > { %v2178_v39 = vadd.f32 %v2160_v59, %v3926_v17  ;;  %v2672_v17 = vld [vmem:[%s4408_s4 + $0x58] sm:$0xff] }
 0x940   : > { %2259 = vmatpush.msrb.mxu0 %v2672_v17 }
 0x941   : > { %v4238_v62 = vadd.f32 %v2184_v25, %v2178_v39 }
 0x943   : > { %v2199_v48 = vmax.f32 %v4238_v62, 0.0  ;;  %v2152_v41 = vpop.permute.xlu0 %2151 }
 0x944   : > { %v2174_v61 = vadd.f32 %v2152_v41, %v3787_v51  ;;  %v2671_v51 = vld [vmem:[%s4408_s4 + $0x50] sm:$0xff] }
 0x945   : > { %2225 = vrot.lane.b32.xlu1 %v2199_v48, %s2916_s11  ;;  %2260 = vmatpush.msrb.mxu0 %v2671_v51 }
 0x946   : > { %v4245_v58 = vadd.f32 %v2184_v25, %v2174_v61 }
 0x947   : > { %2261 = vmatpush.msrb.mxu0 %v2670_v4 }
 0x948   : > { %v2195_v9 = vmax.f32 %v4245_v58, 0.0 }
 0x949   : > { %2262 = vmatpush.msrb.mxu0 %v2669_v53 }
 0x94a   : > { %2217 = vrot.lane.b32.xlu2 %v2195_v9, %s2916_s11 }
 0x966   : > { %v2156_v40 = vpop.permute.xlu0 %2155 }
 0x967   : > { %v2176_v55 = vadd.f32 %v2156_v40, %v3865_v45 }
 0x969   : > { %v4264_v13 = vadd.f32 %v2184_v25, %v2176_v55 }
 0x96b   : > { %v2197_v14 = vmax.f32 %v4264_v13, 0.0 }
 0x96d   : > { %2221 = vrot.lane.b32.xlu2 %v2197_v14, %s2916_s11 }
 0x96e   : > { %v2158_v5 = vpop.permute.xlu1 %2157 }
 0x96f   : > { %v2177_v36 = vadd.f32 %v2158_v5, %v3884_v63 }
 0x971   : > { %v4271_v37 = vadd.f32 %v2184_v25, %v2177_v36 }
 0x973   : > { %v2198_v30 = vmax.f32 %v4271_v37, 0.0 }
 0x975   : > { %2223 = vrot.lane.b32.xlu0 %v2198_v30, %s2916_s11 }
 0x976   : > { %v2162_v45 = vpop.permute.xlu1 %2161 }
 0x977   : > { %v2179_v56 = vadd.f32 %v2162_v45, %v3954_v23 }
 0x979   : > { %v4278_v8 = vadd.f32 %v2184_v25, %v2179_v56 }
 0x97b   : > { %v2200_v2 = vmax.f32 %v4278_v8, 0.0 }
 0x97d   : > { %2227 = vrot.lane.b32.xlu2 %v2200_v2, %s2916_s11 }
 0x985   : > { %2330 = vrot.lane.b32.xlu2 %v2328_v6, %s2916_s11 }
 0x98d   : > { %2351 = vrot.lane.b32.xlu2 %v2349_v35, %s2916_s11 }
 0x995   : > { %v2216_v63 = vpop.permute.xlu0 %2215 }
 0x996   : > { %2673 = vmatmul.msk.f32.vlgmr.msrb.gmra.mxu0 %vm1491_vm0, %v2216_v63 }
 0x9a2   : > { %v2220_v27 = vpop.permute.xlu1 %2219 }
 0x9a3   : > { %v2164_v12 = vpop.permute.xlu0 %2163 }
 0x9a4   : > { %v2180_v7 = vadd.f32 %v2164_v12, %v3963_v15  ;;  %v2218_v1 = vpop.permute.xlu2 %2217 }
 0x9a5   : > { %2674 = vmatmul.msk.f32.gmra.mxu0 %vm1491_vm0, %v2218_v1 }
 0x9a6   : > { %v4287_v38 = vadd.f32 %v2184_v25, %v2180_v7 }
 0x9a8   : > { %v2201_v23 = vmax.f32 %v4287_v38, 0.0 }
 0x9aa   : > { %2229 = vrot.lane.b32.xlu0 %v2201_v23, %s2916_s11 }
 0x9ad   : > { %2675 = vmatmul.msk.f32.gmra.mxu0 %vm1491_vm0, %v2220_v27 }
 0x9b7   : > { %v2226_v15 = vpop.permute.xlu1 %2225 }
 0x9c7   : > { %v2222_v20 = vpop.permute.xlu2 %2221 }
 0x9c8   : > { %2676 = vmatmul.msk.f32.gmra.mxu0 %vm1491_vm0, %v2222_v20 }
 0x9d7   : > { %v2228_v3 = vpop.permute.xlu2 %2227 }
 0x9df   : > { %v2331_v25 = vpop.permute.xlu2 %2330 }
 0x9e7   : > { %v2224_v50 = vpop.permute.xlu0 %2223  ;;  %v2352_v22 = vpop.permute.xlu2 %2351 }
 0x9e8   : > { %2677 = vmatmul.msk.f32.gmra.mxu0 %vm1491_vm0, %v2224_v50 }
 0x9f0   : > { %2678 = vmatmul.msk.f32.gmra.mxu0 %vm1491_vm0, %v2226_v15 }
 0x9f8   : > { %2679 = vmatmul.msk.f32.gmra.mxu0 %vm1491_vm0, %v2228_v3 }
 0xa13   : > { %v2264_v54 = vpop.f32.mrf.mxu0 }
 0xa14   : > { %2296 = vrot.lane.b32.xlu1 %v2264_v54, %s2916_s11 }
 0xa1c   : > { %v2230_v24 = vpop.permute.xlu0 %2229 }
 0xa1d   : > { %2680 = vmatmul.msk.f32.gmra.mxu0 %vm1491_vm0, %v2230_v24 }
 0xa22   : > { %v2267_v32 = vpop.f32.mrf.mxu0 }
 0xa23   : > { %2298 = vrot.lane.b32.xlu0 %v2267_v32, %s2916_s11 }
 0xa2a   : > { %v2270_v60 = vpop.f32.mrf.mxu0 }
 0xa2b   : > { %2300 = vrot.lane.b32.xlu1 %v2270_v60, %s2916_s11 }
 0xa45   : > { %v2273_v46 = vpop.f32.mrf.mxu0 }
 0xa46   : > { %2302 = vrot.lane.b32.xlu0 %v2273_v46, %s2916_s11 }
 0xa65   : > { %v2276_v0 = vpop.f32.mrf.mxu0 }
 0xa66   : > { %2304 = vrot.lane.b32.xlu1 %v2276_v0, %s2916_s11 }
 0xa6d   : > { %v2279_v11 = vpop.f32.mrf.mxu0 }
 0xa6e   : > { %2306 = vrot.lane.b32.xlu2 %v2279_v11, %s2916_s11 }
 0xa75   : > { %v2282_v34 = vpop.f32.mrf.mxu0 }
 0xa76   : > { %2308 = vrot.lane.b32.xlu0 %v2282_v34, %s2916_s11 }
 0xa86   : > { %v2297_v31 = vpop.permute.xlu1 %2296 }
 0xa87   : > { %v2320_v28 = vadd.f32 %v2297_v31, %v2194_v49 }
 0xa89   : > { %v2333_v43 = vadd.f32 %v2331_v25, %v2320_v28 }
 0xa8b   : > { %v2341_v42 = vmax.f32 %v2333_v43, 0.0 }
 0xa8d   : > { %v2354_v59 = vmul.f32 %v2352_v22, %v2341_v42 }
 0xa8f   : > { %2370 = vrot.lane.b32.xlu2 %v2354_v59, %s2916_s11 }
 0xa95   : > { %v2299_v39 = vpop.permute.xlu0 %2298 }
 0xa96   : > { %v2321_v41 = vadd.f32 %v2299_v39, %v2195_v9 }
 0xa98   : > { %v2334_v61 = vadd.f32 %v2331_v25, %v2321_v41 }
 0xa9a   : > { %v2342_v17 = vmax.f32 %v2334_v61, 0.0  ;;  %v2285_v51 = vpop.f32.mrf.mxu0 }
 0xa9b   : > { %2310 = vrot.lane.b32.xlu1 %v2285_v51, %s2916_s11 }
 0xa9c   : > { %v2355_v4 = vmul.f32 %v2352_v22, %v2342_v17 }
 0xa9d   : > { %v2301_v53 = vpop.permute.xlu1 %2300 }
 0xa9e   : > { %v2322_v33 = vadd.f32 %v2301_v53, %v2196_v18  ;;  %2372 = vrot.lane.b32.xlu0 %v2355_v4, %s2916_s11 }
 0xaa0   : > { %v2335_v49 = vadd.f32 %v2331_v25, %v2322_v33 }
 0xaa2   : > { %v2343_v40 = vmax.f32 %v2335_v49, 0.0 }
 0xaa4   : > { %v2356_v55 = vmul.f32 %v2352_v22, %v2343_v40 }
 0xaa6   : > { %2374 = vrot.lane.b32.xlu1 %v2356_v55, %s2916_s11 }
 0xab8   : > { %v2303_v5 = vpop.permute.xlu0 %2302 }
 0xab9   : > { %v2323_v58 = vadd.f32 %v2303_v5, %v2197_v14 }
 0xabb   : > { %v2336_v9 = vadd.f32 %v2331_v25, %v2323_v58 }
 0xabd   : > { %v2344_v36 = vmax.f32 %v2336_v9, 0.0 }
 0xabf   : > { %v2357_v45 = vmul.f32 %v2352_v22, %v2344_v36 }
 0xac1   : > { %2376 = vrot.lane.b32.xlu2 %v2357_v45, %s2916_s11 }
 0xac8   : > { %v2307_v56 = vpop.permute.xlu2 %2306 }
 0xac9   : > { %v2325_v44 = vadd.f32 %v2307_v56, %v2199_v48 }
 0xacb   : > { %v2338_v18 = vadd.f32 %v2331_v25, %v2325_v44 }
 0xacd   : > { %v2346_v63 = vmax.f32 %v2338_v18, 0.0 }
 0xacf   : > { %v2359_v12 = vmul.f32 %v2352_v22, %v2346_v63 }
 0xad1   : > { %2380 = vrot.lane.b32.xlu1 %v2359_v12, %s2916_s11 }
 0xad8   : > { %v2305_v7 = vpop.permute.xlu1 %2304 }
 0xad9   : > { %v2324_v1 = vadd.f32 %v2305_v7, %v2198_v30 }
 0xadb   : > { %v2337_v13 = vadd.f32 %v2331_v25, %v2324_v1 }
 0xadd   : > { %v2345_v14 = vmax.f32 %v2337_v13, 0.0 }
 0xadf   : > { %v2358_v27 = vmul.f32 %v2352_v22, %v2345_v14 }
 0xae1   : > { %2378 = vrot.lane.b32.xlu0 %v2358_v27, %s2916_s11 }
 0xae8   : > { %v2309_v20 = vpop.permute.xlu0 %2308 }
 0xae9   : > { %v2326_v50 = vadd.f32 %v2309_v20, %v2200_v2  ;;  %v2371_v3 = vpop.permute.xlu2 %2370 }
 0xaea   : > { %v2394_v6 = vsel %vm1491_vm0, %v2371_v3, 0.0 }
 0xaeb   : > { %v2339_v62 = vadd.f32 %v2331_v25, %v2326_v50 }
 0xaed   : > { %v2347_v48 = vmax.f32 %v2339_v62, 0.0 }
 0xaef   : > { %v2360_v15 = vmul.f32 %v2352_v22, %v2347_v48 }
 0xaf1   : > { %2382 = vrot.lane.b32.xlu2 %v2360_v15, %s2916_s11 }
 0xafb   : > { %2395 = vadd.xlane.f32.xlu1 %v2394_v6 }
 0xb0d   : > { %v2311_v37 = vpop.permute.xlu1 %2310 }
 0xb0e   : > { %v2327_v30 = vadd.f32 %v2311_v37, %v2201_v23 }
 0xb10   : > { %v2340_v35 = vadd.f32 %v2331_v25, %v2327_v30  ;;  %v2373_v32 = vpop.permute.xlu0 %2372 }
 0xb11   : > { %v2397_v8 = vsel %vm1491_vm0, %v2373_v32, 0.0 }
 0xb12   : > { %v2348_v54 = vmax.f32 %v2340_v35, 0.0 }
 0xb14   : > { %v2361_v24 = vmul.f32 %v2352_v22, %v2348_v54 }
 0xb16   : > { %2384 = vrot.lane.b32.xlu0 %v2361_v24, %s2916_s11 }
 0xb18   : > { %v2375_v46 = vpop.permute.xlu1 %2374 }
 0xb19   : > { %v2400_v0 = vsel %vm1491_vm0, %v2375_v46, 0.0 }
 0xb1a   : > { %2398 = vadd.xlane.f32.xlu2 %v2397_v8 }
 0xb1b   : > { %v2377_v2 = vpop.permute.xlu2 %2376 }
 0xb1c   : > { %v2403_v60 = vsel %vm1491_vm0, %v2377_v2, 0.0 }
 0xb22   : > { %2404 = vadd.xlane.f32.xlu2 %v2403_v60 }
 0xb40   : > { %2401 = vadd.xlane.f32.xlu0 %v2400_v0 }
 0xb43   : > { %v2381_v11 = vpop.permute.xlu1 %2380 }
 0xb44   : > { %v2409_v38 = vsel %vm1491_vm0, %v2381_v11, 0.0 }
 0xb48   : > { %2410 = vadd.xlane.f32.xlu0 %v2409_v38 }
 0xb4b   : > { %v2383_v23 = vpop.permute.xlu2 %2382 }
 0xb4c   : > { %v2412_v34 = vsel %vm1491_vm0, %v2383_v23, 0.0 }
 0xb4d   : > { %2413 = vadd.xlane.f32.xlu2 %v2412_v34 }
 0xb53   : > { %v2379_v25 = vpop.permute.xlu0 %2378 }
 0xb54   : > { %v2406_v31 = vsel %vm1491_vm0, %v2379_v25, 0.0 }
 0xb55   : > { %2407 = vadd.xlane.f32.xlu1 %v2406_v31 }
 0xb6e   : > { %v2396_v28 = vpop.xlane.xlu1 %2395 }
 0xb6f   : > { %v2418_v43 = vadd.f32 %v2396_v28, %v3994_v29 }
 0xb71   : > { %2434 = vrot.lane.b32.xlu0 %v2418_v43, %s2917_s15 }
 0xb88   : > { %v2385_v22 = vpop.permute.xlu0 %2384 }
 0xb89   : > { %v2415_v42 = vsel %vm1491_vm0, %v2385_v22, 0.0 }
 0xb8a   : > { %2416 = vadd.xlane.f32.xlu1 %v2415_v42 }
 0xb8d   : > { %v2399_v59 = vpop.xlane.xlu2 %2398 }
 0xb8e   : > { %v2419_v39 = vadd.f32 %v2399_v59, %v3994_v29 }
 0xb90   : > { %2436 = vrot.lane.b32.xlu2 %v2419_v39, %s2917_s15 }
 0xb95   : > { %v2405_v41 = vpop.xlane.xlu2 %2404 }
 0xb96   : > { %v2421_v61 = vadd.f32 %v2405_v41, %v3994_v29 }
 0xb98   : > { %2440 = vrot.lane.b32.xlu0 %v2421_v61, %s2917_s15 }
 0xbb3   : > { %v2402_v17 = vpop.xlane.xlu0 %2401 }
 0xbb4   : > { %v2420_v51 = vadd.f32 %v2402_v17, %v3994_v29 }
 0xbb6   : > { %2438 = vrot.lane.b32.xlu1 %v2420_v51, %s2917_s15 }
 0xbbb   : > { %v2411_v4 = vpop.xlane.xlu0 %2410 }
 0xbbc   : > { %v2423_v53 = vadd.f32 %v2411_v4, %v3994_v29 }
 0xbbe   : > { %2444 = vrot.lane.b32.xlu2 %v2423_v53, %s2917_s15 }
 0xbc0   : > { %v2414_v33 = vpop.xlane.xlu2 %2413 }
 0xbc1   : > { %v2424_v49 = vadd.f32 %v2414_v33, %v3994_v29 }
 0xbc3   : > { %2446 = vrot.lane.b32.xlu1 %v2424_v49, %s2917_s15 }
 0xbc8   : > { %v2408_v40 = vpop.xlane.xlu1 %2407 }
 0xbc9   : > { %v2422_v55 = vadd.f32 %v2408_v40, %v3994_v29 }
 0xbcb   : > { %2442 = vrot.lane.b32.xlu0 %v2422_v55, %s2917_s15 }
 0xbe3   : > { %v2435_v5 = vpop.permute.xlu0 %2434 }
 0xbe4   : > { %v2458_v58 = vadd.f32 %v2435_v5, %v4173_v57 }
 0xbe6   : > { %2466 = vxpose.xlu2.b32.start [1/8] (short) (narrow) %v2458_v58, 8 }
 0xbea   : > { %v2437_v9 = vpop.permute.xlu2 %2436 }
 0xbeb   : > { %v2459_v36 = vadd.f32 %v2437_v9, %v4178_v52 }
 0xbee   : > { %2467 = vxpose.xlu2.b32.cont [2/8] (short) (narrow) %v2459_v36, 8 }
 0xbfd   : > { %v2417_v45 = vpop.xlane.xlu1 %2416 }
 0xbfe   : > { %v2425_v56 = vadd.f32 %v2417_v45, %v3994_v29 }
 0xc00   : > { %2448 = vrot.lane.b32.xlu0 %v2425_v56, %s2917_s15 }
 0xc0a   : > { %v2441_v63 = vpop.permute.xlu0 %2440 }
 0xc0b   : > { %v2461_v12 = vadd.f32 %v2441_v63, %v4186_v16 }
 0xc18   : > { %v2445_v52 = vpop.permute.xlu2 %2444 }
 0xc19   : > { %v2463_v1 = vadd.f32 %v2445_v52, %v4193_v26 }
 0xc28   : > { %v2439_v44 = vpop.permute.xlu1 %2438 }
 0xc29   : > { %v2460_v18 = vadd.f32 %v2439_v44, %v4182_v19 }
 0xc2b   : > { %2468 = vxpose.xlu2.b32.cont [3/8] (short) (narrow) %v2460_v18, 8 }
 0xc33   : > { %2469 = vxpose.xlu2.b32.cont [4/8] (short) (narrow) %v2461_v12, 8 }
 0xc35   : > { %v2447_v29 = vpop.permute.xlu1 %2446 }
 0xc36   : > { %v2464_v13 = vadd.f32 %v2447_v29, %v4204_v10 }
 0xc3d   : > { %v2443_v57 = vpop.permute.xlu0 %2442 }
 0xc3e   : > { %v2462_v7 = vadd.f32 %v2443_v57, %v4190_v21 }
 0xc40   : > { %2470 = vxpose.xlu2.b32.cont [5/8] (short) (narrow) %v2462_v7, 8 }
 0xc48   : > { %2471 = vxpose.xlu2.b32.cont [6/8] (short) (narrow) %v2463_v1, 8 }
 0xc50   : > { %2472 = vxpose.xlu2.b32.cont [7/8] (short) (narrow) %v2464_v13, 8 }
 0xc72   : > { %v2449_v19 = vpop.permute.xlu0 %2448 }
 0xc73   : > { %v2465_v14 = vadd.f32 %v2449_v19, %v4213_v47 }
 0xc75   : > { %2473 = vxpose.xlu2.b32.end [8/8] (short) (narrow) %v2465_v14, 8 }
 0xcd6   : > { %v2482_v16 = vpop.trf.xlu2 }
 0xcd7   : > { %2499 = vst.msk [vmem:[%s307_s13] sm:$0x1] %vm2498_vm7, %v2482_v16 }
 0xcd8   : > { %2856 = shalt.err (!%p2853_p5)
}
 0xcd9   : > { %2688 = dma.vmem_to_hbm [thread:$0]  (%p2993_p4), %s2513_s19, 16, %s2515_s20, %s2501_s27  }
 0xcda PF: > { %p2694_p6 = scmp.ge.s32.totalorder %s2907_s26, 2  ;;  %s2526_s17 = sand.u32 1, %s2887_s21  }
 0xcdb   : > { %s2527_s18 = scalar_lea.sflag [#allocation3], %s2526_s17 }
 0xcdc   : > { %p2691_p7 = pnand %p2694_p6, %p3000_p8 }
 0xcde   : > { %p2692_p9 = pneg %p2691_p7 }
 0xce0   : > { %2882 = dma.done.wait (%p2692_p9), %s2527_s18, 16  }
 0xce1   : > { %2884 = vsyncadd (%p2692_p9), %s2527_s18, 4294967280  ;;  %s19_s26 = sadd.s32 1, %s2907_s26   ;;  %s4462_s21 = smov %s2891_s22 }
 0xce2   : > { %p16_p10 = scmp.ge.s32.totalorder %s19_s26, 4   ;;  %s4463_s22 = smov %s2895_s23 }
 0xce3   : > { %s4464_s23 = smov %s3006_s10  ;;  %s4465_s24 = smov %s2903_s25 }
 0xce4   : > { %s4466_s25 = smov %s4468_s29  ;;  %18 = sbr.rel (!%p16_p10) target bundleno = 4 (0x4), region = 87 }
 0xce9   :  { %2532 = vsyncpa [#allocation3], 1 }
 0xcea   :  { %2534 = vsyncpa [#allocation3 + $0x1], 1 }

</bundles_post_ra>
